<compile_context>
chip_gen: v6e
topology: v6e:2x2x1
jax: 0.10.0
libtpu: 0.0.40
codegen_flags: <defaults>
</compile_context>

<pallas_src>
import numpy as np
import jax
import jax.numpy as jnp
from jax.experimental import pallas as pl
from jax.experimental.pallas import tpu as pltpu

SIGMAS = (0.5, 1.0, 2.0, 4.0, 8.0)
DATA_RANGE = 1.0
K1, K2 = 0.01, 0.03
ALPHA = 0.025
COMPENSATION = 200.0
C1 = (K1 * DATA_RANGE) ** 2
C2 = (K2 * DATA_RANGE) ** 2
FILTER_SIZE = int(4 * SIGMAS[-1] + 1)   # 33
PAD = int(2 * SIGMAS[-1])               # 16
NSIG = len(SIGMAS)                      # 5
NCH = 3 * NSIG                          # 15 grouped-conv output channels

# pre-folded output scales
CA = COMPENSATION * ALPHA
CB = COMPENSATION * (1.0 - ALPHA) / DATA_RANGE
INV3 = 1.0 / 3.0


def _unique_pairs():
    # grouped conv (groups=3): output channel j uses input channel j//5 and
    # gaussian sigma index j//3.  Only 7 distinct pairs exist among the 15.
    counts = {}
    for j in range(NCH):
        key = (j // 5, j // 3)
        counts[key] = counts.get(key, 0) + 1
    return tuple(sorted((c, s, m) for (c, s), m in counts.items()))


PAIRS = _unique_pairs()        # ((0,0,3),(0,1,2),(1,1,1),(1,2,3),(1,3,1),(2,3,2),(2,4,3))
LM_PAIR = (2, NSIG - 1)        # channels -1,-2,-3 are all this pair -> lM = l^3


def _ms_ssim_l1_kernel(x_ref, y_ref, gw_ref, ght_ref, o_ref):
    # x_ref/y_ref : (1, 3, H, W)   unpadded inputs
    # gw_ref      : (5, W, W)      truncated banded gaussian (column pass)
    # ght_ref     : (5, H, H)      transposed truncated banded gaussian (row pass)
    # o_ref       : (1, H, 1)      per-row partial sums of the loss map
    H, W = x_ref.shape[2], x_ref.shape[3]

    xcs = [x_ref[0, c] for c in range(3)]
    ycs = [y_ref[0, c] for c in range(3)]
    # per-channel stacked moments [x, y, x*x, y*y, x*y] along rows: (5*H, W)
    zs = [jnp.concatenate([xc, yc, xc * xc, yc * yc, xc * yc], axis=0)
          for xc, yc in zip(xcs, ycs)]

    # summed absolute difference over channels; blurring it with the sigma=8
    # mask and dividing by 3 equals the channel-mean of the grouped-conv L1.
    d = (jnp.abs(xcs[0] - ycs[0]) + jnp.abs(xcs[1] - ycs[1])
         + jnp.abs(xcs[2] - ycs[2]))

    pics = None   # running prod_j cs_j             (H, W)
    lM = None     # l^3 of the sigma=8 pair          (H, W)
    gl1 = None    # gaussian-weighted mean L1        (H, W)
    for (c, s, mult) in PAIRS:
        is_lm = (c, s) == LM_PAIR
        gw = gw_ref[s]      # (W, W)
        ght = ght_ref[s]    # (H, H)

        z = zs[c]
        nm = 5
        if is_lm:
            # ride the L1 blur on the same fused matmul as the sigma=8 moments
            z = jnp.concatenate([z, d], axis=0)                        # (6H, W)
            nm = 6

        # fused column pass for all moment blocks of this pair (one MXU matmul)
        t = jnp.dot(z, gw, preferred_element_type=jnp.float32)         # (nm*H, W)
        # row pass per moment block via static sublane slices.
        mom = [jnp.dot(ght, t[m * H:(m + 1) * H],
                       preferred_element_type=jnp.float32)             # (H, W)
               for m in range(nm)]
        mux, muy, ex2, ey2, exy = mom[:5]

        mux2 = mux * mux
        muy2 = muy * muy
        muxy = mux * muy
        sigmax2 = ex2 - mux2
        sigmay2 = ey2 - muy2
        sigmaxy = exy - muxy

        cs = (2.0 * sigmaxy + C2) / (sigmax2 + sigmay2 + C2)
        contrib = cs
        for _ in range(mult - 1):        # fold multiplicity into the product
            contrib = contrib * cs
        pics = contrib if pics is None else pics * contrib

        if is_lm:                        # luminance only where it feeds lM
            l = (2.0 * muxy + C1) / (mux2 + muy2 + C1)
            lM = l * l * l
            gl1 = mom[5] * INV3

    loss_ms_ssim = 1.0 - lM * pics                                      # (H, W)
    loss_mix = CA * loss_ms_ssim + CB * gl1

    # per-row partial sums; the mean is finished in the wrapper (avoids a
    # lane-masked (H, W) store when W is not a multiple of 128).
    o_ref[...] = jnp.sum(loss_mix, axis=1, keepdims=True)[None]         # (1, H, 1)


def _gauss_1d(size, sigma):
    coords = np.arange(size, dtype=np.float32) - size // 2
    g = np.exp(-coords ** 2 / (2.0 * sigma ** 2))
    return (g / g.sum()).astype(np.float32)


def _banded_trunc(g, n):
    # G[r, o] = g[r + PAD - o] inside the 33-tap band, else 0.  Multiplying the
    # *unpadded* signal by G reproduces the zero-padded conv:
    #   (z @ G)[h, o] = sum_w g[w + PAD - o] * z[h, w]
    idx = np.arange(n)
    k = idx[:, None] + PAD - idx[None, :]
    valid = (k >= 0) & (k < FILTER_SIZE)
    return np.where(valid, g[np.clip(k, 0, FILTER_SIZE - 1)], 0.0).astype(np.float32)


@jax.jit
def ms_ssim_l1_loss(x, y):
    B, C, H, W = x.shape
    assert C == 3, "MS_SSIM_L1_LOSS expects 3 input channels (groups=3)"

    # trace-time numpy constants (baked into the executable)
    g1d = [_gauss_1d(FILTER_SIZE, s) for s in SIGMAS]
    gw = np.stack([_banded_trunc(g, W) for g in g1d])        # (5, W, W)
    ght = np.stack([_banded_trunc(g, H).T for g in g1d])     # (5, H, H)

    xf = x.astype(jnp.float32)
    yf = y.astype(jnp.float32)

    partial = pl.pallas_call(
        _ms_ssim_l1_kernel,
        out_shape=jax.ShapeDtypeStruct((B, H, 1), jnp.float32),
        grid_spec=pltpu.PrefetchScalarGridSpec(
            num_scalar_prefetch=0,
            grid=(B,),
            in_specs=[
                pl.BlockSpec((1, 3, H, W), lambda b: (b, 0, 0, 0)),
                pl.BlockSpec((1, 3, H, W), lambda b: (b, 0, 0, 0)),
                pl.BlockSpec((NSIG, W, W), lambda b: (0, 0, 0)),
                pl.BlockSpec((NSIG, H, H), lambda b: (0, 0, 0)),
            ],
            out_specs=pl.BlockSpec((1, H, 1), lambda b: (b, 0, 0)),
        ),
        compiler_params=pltpu.CompilerParams(
            dimension_semantics=("parallel",),
            vmem_limit_bytes=48 * 1024 * 1024),
    )(xf, yf, jnp.asarray(gw), jnp.asarray(ght))

    return jnp.sum(partial) / (B * H * W)


def _reference(x, y):
    # pure-JAX reference using the full (non-separable) grouped 2-D conv,
    # mirroring the PyTorch forward exactly.
    g1d = [_gauss_1d(FILTER_SIZE, s) for s in SIGMAS]
    masks = np.zeros((NCH, 1, FILTER_SIZE, FILTER_SIZE), np.float32)
    for j in range(NCH):
        masks[j, 0] = np.outer(g1d[j // 3], g1d[j // 3])
    masks = jnp.asarray(masks)

    def conv(z, w, groups):
        return jax.lax.conv_general_dilated(
            z, w, window_strides=(1, 1),
            padding=[(PAD, PAD), (PAD, PAD)],
            dimension_numbers=('NCHW', 'OIHW', 'NCHW'),
            feature_group_count=groups)

    x = x.astype(jnp.float32)
    y = y.astype(jnp.float32)
    mux = conv(x, masks, 3)
    muy = conv(y, masks, 3)
    mux2, muy2, muxy = mux * mux, muy * muy, mux * muy
    sigmax2 = conv(x * x, masks, 3) - mux2
    sigmay2 = conv(y * y, masks, 3) - muy2
    sigmaxy = conv(x * y, masks, 3) - muxy
    l = (2 * muxy + C1) / (mux2 + muy2 + C1)
    cs = (2 * sigmaxy + C2) / (sigmax2 + sigmay2 + C2)
    lM = l[:, -1] * l[:, -2] * l[:, -3]
    pics = jnp.prod(cs, axis=1)
    loss_ms_ssim = 1 - lM * pics
    loss_l1 = jnp.abs(x - y)
    gl1 = conv(loss_l1, masks[-3:], 3).mean(axis=1)
    loss_mix = COMPENSATION * (ALPHA * loss_ms_ssim
                               + (1 - ALPHA) * gl1 / DATA_RANGE)
    return loss_mix.mean()


if __name__ == "__main__":
    key = jax.random.PRNGKey(0)
    kx, ky = jax.random.split(key)
    B, C, H, W = 2, 3, 16, 16
    x = jax.random.uniform(kx, (B, C, H, W), dtype=jnp.float32)
    y = jax.random.uniform(ky, (B, C, H, W), dtype=jnp.float32)

    loss = jax.block_until_ready(ms_ssim_l1_loss(x, y))
    ref = jax.block_until_ready(_reference(x, y))

    assert jnp.isfinite(loss)
    np.testing.assert_allclose(np.asarray(loss), np.asarray(ref),
                               rtol=2e-4, atol=2e-4)
    print("KERNEL_OK")
</pallas_src>

<mosaic_0001>
module attributes {stable_mosaic.version = 11 : i64} {
  func.func @_ms_ssim_l1_kernel(%arg0: i32, %arg1: memref<1x3x16x16xf32, #tpu.memory_space<vmem>>, %arg2: memref<1x3x16x16xf32, #tpu.memory_space<vmem>>, %arg3: memref<5x16x16xf32, #tpu.memory_space<vmem>>, %arg4: memref<5x16x16xf32, #tpu.memory_space<vmem>>, %arg5: memref<1x16x1xf32, #tpu.memory_space<vmem>>) attributes {dimension_semantics = [#tpu.dimension_semantics<parallel>], iteration_bounds = array<i64: 2>, scalar_prefetch = 0 : i64, scratch_operands = 0 : i64, tpu.core_type = #tpu.core_type<tc>, window_params = [{transform_indices = @transform_0, window_bounds = array<i64: 1, 3, 16, 16>}, {transform_indices = @transform_1, window_bounds = array<i64: 1, 3, 16, 16>}, {pipeline_mode = #tpu.pipeline_mode<synchronous>, transform_indices = @transform_2, window_bounds = array<i64: 5, 16, 16>}, {pipeline_mode = #tpu.pipeline_mode<synchronous>, transform_indices = @transform_3, window_bounds = array<i64: 5, 16, 16>}, {transform_indices = @transform_4, window_bounds = array<i64: 1, 16, 1>}]} {
    %c0 = arith.constant 0 : index
    %c0_0 = arith.constant 0 : index
    %c0_1 = arith.constant 0 : index
    %c0_2 = arith.constant 0 : index
    %0 = vector.load %arg1[%c0, %c0_0, %c0_1, %c0_2] : memref<1x3x16x16xf32, #tpu.memory_space<vmem>>, vector<1x1x16x16xf32>
    %1 = vector.shape_cast %0 : vector<1x1x16x16xf32> to vector<16x16xf32>
    %c0_3 = arith.constant 0 : index
    %c1 = arith.constant 1 : index
    %c0_4 = arith.constant 0 : index
    %c0_5 = arith.constant 0 : index
    %2 = vector.load %arg1[%c0_3, %c1, %c0_4, %c0_5] : memref<1x3x16x16xf32, #tpu.memory_space<vmem>>, vector<1x1x16x16xf32>
    %3 = vector.shape_cast %2 : vector<1x1x16x16xf32> to vector<16x16xf32>
    %c0_6 = arith.constant 0 : index
    %c2 = arith.constant 2 : index
    %c0_7 = arith.constant 0 : index
    %c0_8 = arith.constant 0 : index
    %4 = vector.load %arg1[%c0_6, %c2, %c0_7, %c0_8] : memref<1x3x16x16xf32, #tpu.memory_space<vmem>>, vector<1x1x16x16xf32>
    %5 = vector.shape_cast %4 : vector<1x1x16x16xf32> to vector<16x16xf32>
    %c0_9 = arith.constant 0 : index
    %c0_10 = arith.constant 0 : index
    %c0_11 = arith.constant 0 : index
    %c0_12 = arith.constant 0 : index
    %6 = vector.load %arg2[%c0_9, %c0_10, %c0_11, %c0_12] : memref<1x3x16x16xf32, #tpu.memory_space<vmem>>, vector<1x1x16x16xf32>
    %7 = vector.shape_cast %6 : vector<1x1x16x16xf32> to vector<16x16xf32>
    %c0_13 = arith.constant 0 : index
    %c1_14 = arith.constant 1 : index
    %c0_15 = arith.constant 0 : index
    %c0_16 = arith.constant 0 : index
    %8 = vector.load %arg2[%c0_13, %c1_14, %c0_15, %c0_16] : memref<1x3x16x16xf32, #tpu.memory_space<vmem>>, vector<1x1x16x16xf32>
    %9 = vector.shape_cast %8 : vector<1x1x16x16xf32> to vector<16x16xf32>
    %c0_17 = arith.constant 0 : index
    %c2_18 = arith.constant 2 : index
    %c0_19 = arith.constant 0 : index
    %c0_20 = arith.constant 0 : index
    %10 = vector.load %arg2[%c0_17, %c2_18, %c0_19, %c0_20] : memref<1x3x16x16xf32, #tpu.memory_space<vmem>>, vector<1x1x16x16xf32>
    %11 = vector.shape_cast %10 : vector<1x1x16x16xf32> to vector<16x16xf32>
    %12 = arith.mulf %1, %1 : vector<16x16xf32>
    %13 = arith.mulf %7, %7 : vector<16x16xf32>
    %14 = arith.mulf %1, %7 : vector<16x16xf32>
    %15 = tpu.concatenate %1, %7, %12, %13, %14 in 0 : vector<16x16xf32>, vector<16x16xf32>, vector<16x16xf32>, vector<16x16xf32>, vector<16x16xf32> -> vector<80x16xf32>
    %16 = arith.mulf %3, %3 : vector<16x16xf32>
    %17 = arith.mulf %9, %9 : vector<16x16xf32>
    %18 = arith.mulf %3, %9 : vector<16x16xf32>
    %19 = tpu.concatenate %3, %9, %16, %17, %18 in 0 : vector<16x16xf32>, vector<16x16xf32>, vector<16x16xf32>, vector<16x16xf32>, vector<16x16xf32> -> vector<80x16xf32>
    %20 = arith.mulf %5, %5 : vector<16x16xf32>
    %21 = arith.mulf %11, %11 : vector<16x16xf32>
    %22 = arith.mulf %5, %11 : vector<16x16xf32>
    %23 = tpu.concatenate %5, %11, %20, %21, %22 in 0 : vector<16x16xf32>, vector<16x16xf32>, vector<16x16xf32>, vector<16x16xf32>, vector<16x16xf32> -> vector<80x16xf32>
    %24 = arith.subf %1, %7 : vector<16x16xf32>
    %25 = math.absf %24 : vector<16x16xf32>
    %26 = arith.subf %3, %9 : vector<16x16xf32>
    %27 = math.absf %26 : vector<16x16xf32>
    %28 = arith.addf %25, %27 : vector<16x16xf32>
    %29 = arith.subf %5, %11 : vector<16x16xf32>
    %30 = math.absf %29 : vector<16x16xf32>
    %31 = arith.addf %28, %30 : vector<16x16xf32>
    %c0_21 = arith.constant 0 : index
    %c0_22 = arith.constant 0 : index
    %c0_23 = arith.constant 0 : index
    %32 = vector.load %arg3[%c0_21, %c0_22, %c0_23] : memref<5x16x16xf32, #tpu.memory_space<vmem>>, vector<1x16x16xf32>
    %33 = vector.shape_cast %32 : vector<1x16x16xf32> to vector<16x16xf32>
    %c0_24 = arith.constant 0 : index
    %c0_25 = arith.constant 0 : index
    %c0_26 = arith.constant 0 : index
    %34 = vector.load %arg4[%c0_24, %c0_25, %c0_26] : memref<5x16x16xf32, #tpu.memory_space<vmem>>, vector<1x16x16xf32>
    %35 = vector.shape_cast %34 : vector<1x16x16xf32> to vector<16x16xf32>
    %cst = arith.constant dense<0.000000e+00> : vector<80x16xf32>
    %36 = tpu.matmul %15, %33, %cst {dimension_numbers = #tpu.dot_dimension_numbers<[1], [0], [0], [1], [0, 0, 1, 1], [], []>} : vector<80x16xf32>, vector<16x16xf32>, vector<80x16xf32> -> vector<80x16xf32>
    %37 = vector.extract_strided_slice %36 {offsets = [0, 0], sizes = [16, 16], strides = [1, 1]} : vector<80x16xf32> to vector<16x16xf32>
    %cst_27 = arith.constant dense<0.000000e+00> : vector<16x16xf32>
    %38 = tpu.matmul %35, %37, %cst_27 {dimension_numbers = #tpu.dot_dimension_numbers<[1], [0], [0], [1], [0, 0, 1, 1], [], []>} : vector<16x16xf32>, vector<16x16xf32>, vector<16x16xf32> -> vector<16x16xf32>
    %39 = vector.extract_strided_slice %36 {offsets = [16, 0], sizes = [16, 16], strides = [1, 1]} : vector<80x16xf32> to vector<16x16xf32>
    %cst_28 = arith.constant dense<0.000000e+00> : vector<16x16xf32>
    %40 = tpu.matmul %35, %39, %cst_28 {dimension_numbers = #tpu.dot_dimension_numbers<[1], [0], [0], [1], [0, 0, 1, 1], [], []>} : vector<16x16xf32>, vector<16x16xf32>, vector<16x16xf32> -> vector<16x16xf32>
    %41 = vector.extract_strided_slice %36 {offsets = [32, 0], sizes = [16, 16], strides = [1, 1]} : vector<80x16xf32> to vector<16x16xf32>
    %cst_29 = arith.constant dense<0.000000e+00> : vector<16x16xf32>
    %42 = tpu.matmul %35, %41, %cst_29 {dimension_numbers = #tpu.dot_dimension_numbers<[1], [0], [0], [1], [0, 0, 1, 1], [], []>} : vector<16x16xf32>, vector<16x16xf32>, vector<16x16xf32> -> vector<16x16xf32>
    %43 = vector.extract_strided_slice %36 {offsets = [48, 0], sizes = [16, 16], strides = [1, 1]} : vector<80x16xf32> to vector<16x16xf32>
    %cst_30 = arith.constant dense<0.000000e+00> : vector<16x16xf32>
    %44 = tpu.matmul %35, %43, %cst_30 {dimension_numbers = #tpu.dot_dimension_numbers<[1], [0], [0], [1], [0, 0, 1, 1], [], []>} : vector<16x16xf32>, vector<16x16xf32>, vector<16x16xf32> -> vector<16x16xf32>
    %45 = vector.extract_strided_slice %36 {offsets = [64, 0], sizes = [16, 16], strides = [1, 1]} : vector<80x16xf32> to vector<16x16xf32>
    %cst_31 = arith.constant dense<0.000000e+00> : vector<16x16xf32>
    %46 = tpu.matmul %35, %45, %cst_31 {dimension_numbers = #tpu.dot_dimension_numbers<[1], [0], [0], [1], [0, 0, 1, 1], [], []>} : vector<16x16xf32>, vector<16x16xf32>, vector<16x16xf32> -> vector<16x16xf32>
    %47 = arith.mulf %38, %38 : vector<16x16xf32>
    %48 = arith.mulf %40, %40 : vector<16x16xf32>
    %49 = arith.mulf %38, %40 : vector<16x16xf32>
    %50 = arith.subf %42, %47 : vector<16x16xf32>
    %51 = arith.subf %44, %48 : vector<16x16xf32>
    %52 = arith.subf %46, %49 : vector<16x16xf32>
    %cst_32 = arith.constant 2.000000e+00 : f32
    %53 = vector.broadcast %cst_32 : f32 to vector<16x16xf32>
    %54 = arith.mulf %53, %52 : vector<16x16xf32>
    %cst_33 = arith.constant 8.99999984E-4 : f32
    %55 = vector.broadcast %cst_33 : f32 to vector<16x16xf32>
    %56 = arith.addf %54, %55 : vector<16x16xf32>
    %57 = arith.addf %50, %51 : vector<16x16xf32>
    %cst_34 = arith.constant 8.99999984E-4 : f32
    %58 = vector.broadcast %cst_34 : f32 to vector<16x16xf32>
    %59 = arith.addf %57, %58 : vector<16x16xf32>
    %60 = arith.divf %56, %59 : vector<16x16xf32>
    %61 = arith.mulf %60, %60 : vector<16x16xf32>
    %62 = arith.mulf %61, %60 : vector<16x16xf32>
    %c1_35 = arith.constant 1 : index
    %c0_36 = arith.constant 0 : index
    %c0_37 = arith.constant 0 : index
    %63 = vector.load %arg3[%c1_35, %c0_36, %c0_37] : memref<5x16x16xf32, #tpu.memory_space<vmem>>, vector<1x16x16xf32>
    %64 = vector.shape_cast %63 : vector<1x16x16xf32> to vector<16x16xf32>
    %c1_38 = arith.constant 1 : index
    %c0_39 = arith.constant 0 : index
    %c0_40 = arith.constant 0 : index
    %65 = vector.load %arg4[%c1_38, %c0_39, %c0_40] : memref<5x16x16xf32, #tpu.memory_space<vmem>>, vector<1x16x16xf32>
    %66 = vector.shape_cast %65 : vector<1x16x16xf32> to vector<16x16xf32>
    %cst_41 = arith.constant dense<0.000000e+00> : vector<80x16xf32>
    %67 = tpu.matmul %15, %64, %cst_41 {dimension_numbers = #tpu.dot_dimension_numbers<[1], [0], [0], [1], [0, 0, 1, 1], [], []>} : vector<80x16xf32>, vector<16x16xf32>, vector<80x16xf32> -> vector<80x16xf32>
    %68 = vector.extract_strided_slice %67 {offsets = [0, 0], sizes = [16, 16], strides = [1, 1]} : vector<80x16xf32> to vector<16x16xf32>
    %cst_42 = arith.constant dense<0.000000e+00> : vector<16x16xf32>
    %69 = tpu.matmul %66, %68, %cst_42 {dimension_numbers = #tpu.dot_dimension_numbers<[1], [0], [0], [1], [0, 0, 1, 1], [], []>} : vector<16x16xf32>, vector<16x16xf32>, vector<16x16xf32> -> vector<16x16xf32>
    %70 = vector.extract_strided_slice %67 {offsets = [16, 0], sizes = [16, 16], strides = [1, 1]} : vector<80x16xf32> to vector<16x16xf32>
    %cst_43 = arith.constant dense<0.000000e+00> : vector<16x16xf32>
    %71 = tpu.matmul %66, %70, %cst_43 {dimension_numbers = #tpu.dot_dimension_numbers<[1], [0], [0], [1], [0, 0, 1, 1], [], []>} : vector<16x16xf32>, vector<16x16xf32>, vector<16x16xf32> -> vector<16x16xf32>
    %72 = vector.extract_strided_slice %67 {offsets = [32, 0], sizes = [16, 16], strides = [1, 1]} : vector<80x16xf32> to vector<16x16xf32>
    %cst_44 = arith.constant dense<0.000000e+00> : vector<16x16xf32>
    %73 = tpu.matmul %66, %72, %cst_44 {dimension_numbers = #tpu.dot_dimension_numbers<[1], [0], [0], [1], [0, 0, 1, 1], [], []>} : vector<16x16xf32>, vector<16x16xf32>, vector<16x16xf32> -> vector<16x16xf32>
    %74 = vector.extract_strided_slice %67 {offsets = [48, 0], sizes = [16, 16], strides = [1, 1]} : vector<80x16xf32> to vector<16x16xf32>
    %cst_45 = arith.constant dense<0.000000e+00> : vector<16x16xf32>
    %75 = tpu.matmul %66, %74, %cst_45 {dimension_numbers = #tpu.dot_dimension_numbers<[1], [0], [0], [1], [0, 0, 1, 1], [], []>} : vector<16x16xf32>, vector<16x16xf32>, vector<16x16xf32> -> vector<16x16xf32>
    %76 = vector.extract_strided_slice %67 {offsets = [64, 0], sizes = [16, 16], strides = [1, 1]} : vector<80x16xf32> to vector<16x16xf32>
    %cst_46 = arith.constant dense<0.000000e+00> : vector<16x16xf32>
    %77 = tpu.matmul %66, %76, %cst_46 {dimension_numbers = #tpu.dot_dimension_numbers<[1], [0], [0], [1], [0, 0, 1, 1], [], []>} : vector<16x16xf32>, vector<16x16xf32>, vector<16x16xf32> -> vector<16x16xf32>
    %78 = arith.mulf %69, %69 : vector<16x16xf32>
    %79 = arith.mulf %71, %71 : vector<16x16xf32>
    %80 = arith.mulf %69, %71 : vector<16x16xf32>
    %81 = arith.subf %73, %78 : vector<16x16xf32>
    %82 = arith.subf %75, %79 : vector<16x16xf32>
    %83 = arith.subf %77, %80 : vector<16x16xf32>
    %cst_47 = arith.constant 2.000000e+00 : f32
    %84 = vector.broadcast %cst_47 : f32 to vector<16x16xf32>
    %85 = arith.mulf %84, %83 : vector<16x16xf32>
    %cst_48 = arith.constant 8.99999984E-4 : f32
    %86 = vector.broadcast %cst_48 : f32 to vector<16x16xf32>
    %87 = arith.addf %85, %86 : vector<16x16xf32>
    %88 = arith.addf %81, %82 : vector<16x16xf32>
    %cst_49 = arith.constant 8.99999984E-4 : f32
    %89 = vector.broadcast %cst_49 : f32 to vector<16x16xf32>
    %90 = arith.addf %88, %89 : vector<16x16xf32>
    %91 = arith.divf %87, %90 : vector<16x16xf32>
    %92 = arith.mulf %91, %91 : vector<16x16xf32>
    %93 = arith.mulf %62, %92 : vector<16x16xf32>
    %c1_50 = arith.constant 1 : index
    %c0_51 = arith.constant 0 : index
    %c0_52 = arith.constant 0 : index
    %94 = vector.load %arg3[%c1_50, %c0_51, %c0_52] : memref<5x16x16xf32, #tpu.memory_space<vmem>>, vector<1x16x16xf32>
    %95 = vector.shape_cast %94 : vector<1x16x16xf32> to vector<16x16xf32>
    %c1_53 = arith.constant 1 : index
    %c0_54 = arith.constant 0 : index
    %c0_55 = arith.constant 0 : index
    %96 = vector.load %arg4[%c1_53, %c0_54, %c0_55] : memref<5x16x16xf32, #tpu.memory_space<vmem>>, vector<1x16x16xf32>
    %97 = vector.shape_cast %96 : vector<1x16x16xf32> to vector<16x16xf32>
    %cst_56 = arith.constant dense<0.000000e+00> : vector<80x16xf32>
    %98 = tpu.matmul %19, %95, %cst_56 {dimension_numbers = #tpu.dot_dimension_numbers<[1], [0], [0], [1], [0, 0, 1, 1], [], []>} : vector<80x16xf32>, vector<16x16xf32>, vector<80x16xf32> -> vector<80x16xf32>
    %99 = vector.extract_strided_slice %98 {offsets = [0, 0], sizes = [16, 16], strides = [1, 1]} : vector<80x16xf32> to vector<16x16xf32>
    %cst_57 = arith.constant dense<0.000000e+00> : vector<16x16xf32>
    %100 = tpu.matmul %97, %99, %cst_57 {dimension_numbers = #tpu.dot_dimension_numbers<[1], [0], [0], [1], [0, 0, 1, 1], [], []>} : vector<16x16xf32>, vector<16x16xf32>, vector<16x16xf32> -> vector<16x16xf32>
    %101 = vector.extract_strided_slice %98 {offsets = [16, 0], sizes = [16, 16], strides = [1, 1]} : vector<80x16xf32> to vector<16x16xf32>
    %cst_58 = arith.constant dense<0.000000e+00> : vector<16x16xf32>
    %102 = tpu.matmul %97, %101, %cst_58 {dimension_numbers = #tpu.dot_dimension_numbers<[1], [0], [0], [1], [0, 0, 1, 1], [], []>} : vector<16x16xf32>, vector<16x16xf32>, vector<16x16xf32> -> vector<16x16xf32>
    %103 = vector.extract_strided_slice %98 {offsets = [32, 0], sizes = [16, 16], strides = [1, 1]} : vector<80x16xf32> to vector<16x16xf32>
    %cst_59 = arith.constant dense<0.000000e+00> : vector<16x16xf32>
    %104 = tpu.matmul %97, %103, %cst_59 {dimension_numbers = #tpu.dot_dimension_numbers<[1], [0], [0], [1], [0, 0, 1, 1], [], []>} : vector<16x16xf32>, vector<16x16xf32>, vector<16x16xf32> -> vector<16x16xf32>
    %105 = vector.extract_strided_slice %98 {offsets = [48, 0], sizes = [16, 16], strides = [1, 1]} : vector<80x16xf32> to vector<16x16xf32>
    %cst_60 = arith.constant dense<0.000000e+00> : vector<16x16xf32>
    %106 = tpu.matmul %97, %105, %cst_60 {dimension_numbers = #tpu.dot_dimension_numbers<[1], [0], [0], [1], [0, 0, 1, 1], [], []>} : vector<16x16xf32>, vector<16x16xf32>, vector<16x16xf32> -> vector<16x16xf32>
    %107 = vector.extract_strided_slice %98 {offsets = [64, 0], sizes = [16, 16], strides = [1, 1]} : vector<80x16xf32> to vector<16x16xf32>
    %cst_61 = arith.constant dense<0.000000e+00> : vector<16x16xf32>
    %108 = tpu.matmul %97, %107, %cst_61 {dimension_numbers = #tpu.dot_dimension_numbers<[1], [0], [0], [1], [0, 0, 1, 1], [], []>} : vector<16x16xf32>, vector<16x16xf32>, vector<16x16xf32> -> vector<16x16xf32>
    %109 = arith.mulf %100, %100 : vector<16x16xf32>
    %110 = arith.mulf %102, %102 : vector<16x16xf32>
    %111 = arith.mulf %100, %102 : vector<16x16xf32>
    %112 = arith.subf %104, %109 : vector<16x16xf32>
    %113 = arith.subf %106, %110 : vector<16x16xf32>
    %114 = arith.subf %108, %111 : vector<16x16xf32>
    %cst_62 = arith.constant 2.000000e+00 : f32
    %115 = vector.broadcast %cst_62 : f32 to vector<16x16xf32>
    %116 = arith.mulf %115, %114 : vector<16x16xf32>
    %cst_63 = arith.constant 8.99999984E-4 : f32
    %117 = vector.broadcast %cst_63 : f32 to vector<16x16xf32>
    %118 = arith.addf %116, %117 : vector<16x16xf32>
    %119 = arith.addf %112, %113 : vector<16x16xf32>
    %cst_64 = arith.constant 8.99999984E-4 : f32
    %120 = vector.broadcast %cst_64 : f32 to vector<16x16xf32>
    %121 = arith.addf %119, %120 : vector<16x16xf32>
    %122 = arith.divf %118, %121 : vector<16x16xf32>
    %123 = arith.mulf %93, %122 : vector<16x16xf32>
    %c2_65 = arith.constant 2 : index
    %c0_66 = arith.constant 0 : index
    %c0_67 = arith.constant 0 : index
    %124 = vector.load %arg3[%c2_65, %c0_66, %c0_67] : memref<5x16x16xf32, #tpu.memory_space<vmem>>, vector<1x16x16xf32>
    %125 = vector.shape_cast %124 : vector<1x16x16xf32> to vector<16x16xf32>
    %c2_68 = arith.constant 2 : index
    %c0_69 = arith.constant 0 : index
    %c0_70 = arith.constant 0 : index
    %126 = vector.load %arg4[%c2_68, %c0_69, %c0_70] : memref<5x16x16xf32, #tpu.memory_space<vmem>>, vector<1x16x16xf32>
    %127 = vector.shape_cast %126 : vector<1x16x16xf32> to vector<16x16xf32>
    %cst_71 = arith.constant dense<0.000000e+00> : vector<80x16xf32>
    %128 = tpu.matmul %19, %125, %cst_71 {dimension_numbers = #tpu.dot_dimension_numbers<[1], [0], [0], [1], [0, 0, 1, 1], [], []>} : vector<80x16xf32>, vector<16x16xf32>, vector<80x16xf32> -> vector<80x16xf32>
    %129 = vector.extract_strided_slice %128 {offsets = [0, 0], sizes = [16, 16], strides = [1, 1]} : vector<80x16xf32> to vector<16x16xf32>
    %cst_72 = arith.constant dense<0.000000e+00> : vector<16x16xf32>
    %130 = tpu.matmul %127, %129, %cst_72 {dimension_numbers = #tpu.dot_dimension_numbers<[1], [0], [0], [1], [0, 0, 1, 1], [], []>} : vector<16x16xf32>, vector<16x16xf32>, vector<16x16xf32> -> vector<16x16xf32>
    %131 = vector.extract_strided_slice %128 {offsets = [16, 0], sizes = [16, 16], strides = [1, 1]} : vector<80x16xf32> to vector<16x16xf32>
    %cst_73 = arith.constant dense<0.000000e+00> : vector<16x16xf32>
    %132 = tpu.matmul %127, %131, %cst_73 {dimension_numbers = #tpu.dot_dimension_numbers<[1], [0], [0], [1], [0, 0, 1, 1], [], []>} : vector<16x16xf32>, vector<16x16xf32>, vector<16x16xf32> -> vector<16x16xf32>
    %133 = vector.extract_strided_slice %128 {offsets = [32, 0], sizes = [16, 16], strides = [1, 1]} : vector<80x16xf32> to vector<16x16xf32>
    %cst_74 = arith.constant dense<0.000000e+00> : vector<16x16xf32>
    %134 = tpu.matmul %127, %133, %cst_74 {dimension_numbers = #tpu.dot_dimension_numbers<[1], [0], [0], [1], [0, 0, 1, 1], [], []>} : vector<16x16xf32>, vector<16x16xf32>, vector<16x16xf32> -> vector<16x16xf32>
    %135 = vector.extract_strided_slice %128 {offsets = [48, 0], sizes = [16, 16], strides = [1, 1]} : vector<80x16xf32> to vector<16x16xf32>
    %cst_75 = arith.constant dense<0.000000e+00> : vector<16x16xf32>
    %136 = tpu.matmul %127, %135, %cst_75 {dimension_numbers = #tpu.dot_dimension_numbers<[1], [0], [0], [1], [0, 0, 1, 1], [], []>} : vector<16x16xf32>, vector<16x16xf32>, vector<16x16xf32> -> vector<16x16xf32>
    %137 = vector.extract_strided_slice %128 {offsets = [64, 0], sizes = [16, 16], strides = [1, 1]} : vector<80x16xf32> to vector<16x16xf32>
    %cst_76 = arith.constant dense<0.000000e+00> : vector<16x16xf32>
    %138 = tpu.matmul %127, %137, %cst_76 {dimension_numbers = #tpu.dot_dimension_numbers<[1], [0], [0], [1], [0, 0, 1, 1], [], []>} : vector<16x16xf32>, vector<16x16xf32>, vector<16x16xf32> -> vector<16x16xf32>
    %139 = arith.mulf %130, %130 : vector<16x16xf32>
    %140 = arith.mulf %132, %132 : vector<16x16xf32>
    %141 = arith.mulf %130, %132 : vector<16x16xf32>
    %142 = arith.subf %134, %139 : vector<16x16xf32>
    %143 = arith.subf %136, %140 : vector<16x16xf32>
    %144 = arith.subf %138, %141 : vector<16x16xf32>
    %cst_77 = arith.constant 2.000000e+00 : f32
    %145 = vector.broadcast %cst_77 : f32 to vector<16x16xf32>
    %146 = arith.mulf %145, %144 : vector<16x16xf32>
    %cst_78 = arith.constant 8.99999984E-4 : f32
    %147 = vector.broadcast %cst_78 : f32 to vector<16x16xf32>
    %148 = arith.addf %146, %147 : vector<16x16xf32>
    %149 = arith.addf %142, %143 : vector<16x16xf32>
    %cst_79 = arith.constant 8.99999984E-4 : f32
    %150 = vector.broadcast %cst_79 : f32 to vector<16x16xf32>
    %151 = arith.addf %149, %150 : vector<16x16xf32>
    %152 = arith.divf %148, %151 : vector<16x16xf32>
    %153 = arith.mulf %152, %152 : vector<16x16xf32>
    %154 = arith.mulf %153, %152 : vector<16x16xf32>
    %155 = arith.mulf %123, %154 : vector<16x16xf32>
    %c3 = arith.constant 3 : index
    %c0_80 = arith.constant 0 : index
    %c0_81 = arith.constant 0 : index
    %156 = vector.load %arg3[%c3, %c0_80, %c0_81] : memref<5x16x16xf32, #tpu.memory_space<vmem>>, vector<1x16x16xf32>
    %157 = vector.shape_cast %156 : vector<1x16x16xf32> to vector<16x16xf32>
    %c3_82 = arith.constant 3 : index
    %c0_83 = arith.constant 0 : index
    %c0_84 = arith.constant 0 : index
    %158 = vector.load %arg4[%c3_82, %c0_83, %c0_84] : memref<5x16x16xf32, #tpu.memory_space<vmem>>, vector<1x16x16xf32>
    %159 = vector.shape_cast %158 : vector<1x16x16xf32> to vector<16x16xf32>
    %cst_85 = arith.constant dense<0.000000e+00> : vector<80x16xf32>
    %160 = tpu.matmul %19, %157, %cst_85 {dimension_numbers = #tpu.dot_dimension_numbers<[1], [0], [0], [1], [0, 0, 1, 1], [], []>} : vector<80x16xf32>, vector<16x16xf32>, vector<80x16xf32> -> vector<80x16xf32>
    %161 = vector.extract_strided_slice %160 {offsets = [0, 0], sizes = [16, 16], strides = [1, 1]} : vector<80x16xf32> to vector<16x16xf32>
    %cst_86 = arith.constant dense<0.000000e+00> : vector<16x16xf32>
    %162 = tpu.matmul %159, %161, %cst_86 {dimension_numbers = #tpu.dot_dimension_numbers<[1], [0], [0], [1], [0, 0, 1, 1], [], []>} : vector<16x16xf32>, vector<16x16xf32>, vector<16x16xf32> -> vector<16x16xf32>
    %163 = vector.extract_strided_slice %160 {offsets = [16, 0], sizes = [16, 16], strides = [1, 1]} : vector<80x16xf32> to vector<16x16xf32>
    %cst_87 = arith.constant dense<0.000000e+00> : vector<16x16xf32>
    %164 = tpu.matmul %159, %163, %cst_87 {dimension_numbers = #tpu.dot_dimension_numbers<[1], [0], [0], [1], [0, 0, 1, 1], [], []>} : vector<16x16xf32>, vector<16x16xf32>, vector<16x16xf32> -> vector<16x16xf32>
    %165 = vector.extract_strided_slice %160 {offsets = [32, 0], sizes = [16, 16], strides = [1, 1]} : vector<80x16xf32> to vector<16x16xf32>
    %cst_88 = arith.constant dense<0.000000e+00> : vector<16x16xf32>
    %166 = tpu.matmul %159, %165, %cst_88 {dimension_numbers = #tpu.dot_dimension_numbers<[1], [0], [0], [1], [0, 0, 1, 1], [], []>} : vector<16x16xf32>, vector<16x16xf32>, vector<16x16xf32> -> vector<16x16xf32>
    %167 = vector.extract_strided_slice %160 {offsets = [48, 0], sizes = [16, 16], strides = [1, 1]} : vector<80x16xf32> to vector<16x16xf32>
    %cst_89 = arith.constant dense<0.000000e+00> : vector<16x16xf32>
    %168 = tpu.matmul %159, %167, %cst_89 {dimension_numbers = #tpu.dot_dimension_numbers<[1], [0], [0], [1], [0, 0, 1, 1], [], []>} : vector<16x16xf32>, vector<16x16xf32>, vector<16x16xf32> -> vector<16x16xf32>
    %169 = vector.extract_strided_slice %160 {offsets = [64, 0], sizes = [16, 16], strides = [1, 1]} : vector<80x16xf32> to vector<16x16xf32>
    %cst_90 = arith.constant dense<0.000000e+00> : vector<16x16xf32>
    %170 = tpu.matmul %159, %169, %cst_90 {dimension_numbers = #tpu.dot_dimension_numbers<[1], [0], [0], [1], [0, 0, 1, 1], [], []>} : vector<16x16xf32>, vector<16x16xf32>, vector<16x16xf32> -> vector<16x16xf32>
    %171 = arith.mulf %162, %162 : vector<16x16xf32>
    %172 = arith.mulf %164, %164 : vector<16x16xf32>
    %173 = arith.mulf %162, %164 : vector<16x16xf32>
    %174 = arith.subf %166, %171 : vector<16x16xf32>
    %175 = arith.subf %168, %172 : vector<16x16xf32>
    %176 = arith.subf %170, %173 : vector<16x16xf32>
    %cst_91 = arith.constant 2.000000e+00 : f32
    %177 = vector.broadcast %cst_91 : f32 to vector<16x16xf32>
    %178 = arith.mulf %177, %176 : vector<16x16xf32>
    %cst_92 = arith.constant 8.99999984E-4 : f32
    %179 = vector.broadcast %cst_92 : f32 to vector<16x16xf32>
    %180 = arith.addf %178, %179 : vector<16x16xf32>
    %181 = arith.addf %174, %175 : vector<16x16xf32>
    %cst_93 = arith.constant 8.99999984E-4 : f32
    %182 = vector.broadcast %cst_93 : f32 to vector<16x16xf32>
    %183 = arith.addf %181, %182 : vector<16x16xf32>
    %184 = arith.divf %180, %183 : vector<16x16xf32>
    %185 = arith.mulf %155, %184 : vector<16x16xf32>
    %c3_94 = arith.constant 3 : index
    %c0_95 = arith.constant 0 : index
    %c0_96 = arith.constant 0 : index
    %186 = vector.load %arg3[%c3_94, %c0_95, %c0_96] : memref<5x16x16xf32, #tpu.memory_space<vmem>>, vector<1x16x16xf32>
    %187 = vector.shape_cast %186 : vector<1x16x16xf32> to vector<16x16xf32>
    %c3_97 = arith.constant 3 : index
    %c0_98 = arith.constant 0 : index
    %c0_99 = arith.constant 0 : index
    %188 = vector.load %arg4[%c3_97, %c0_98, %c0_99] : memref<5x16x16xf32, #tpu.memory_space<vmem>>, vector<1x16x16xf32>
    %189 = vector.shape_cast %188 : vector<1x16x16xf32> to vector<16x16xf32>
    %cst_100 = arith.constant dense<0.000000e+00> : vector<80x16xf32>
    %190 = tpu.matmul %23, %187, %cst_100 {dimension_numbers = #tpu.dot_dimension_numbers<[1], [0], [0], [1], [0, 0, 1, 1], [], []>} : vector<80x16xf32>, vector<16x16xf32>, vector<80x16xf32> -> vector<80x16xf32>
    %191 = vector.extract_strided_slice %190 {offsets = [0, 0], sizes = [16, 16], strides = [1, 1]} : vector<80x16xf32> to vector<16x16xf32>
    %cst_101 = arith.constant dense<0.000000e+00> : vector<16x16xf32>
    %192 = tpu.matmul %189, %191, %cst_101 {dimension_numbers = #tpu.dot_dimension_numbers<[1], [0], [0], [1], [0, 0, 1, 1], [], []>} : vector<16x16xf32>, vector<16x16xf32>, vector<16x16xf32> -> vector<16x16xf32>
    %193 = vector.extract_strided_slice %190 {offsets = [16, 0], sizes = [16, 16], strides = [1, 1]} : vector<80x16xf32> to vector<16x16xf32>
    %cst_102 = arith.constant dense<0.000000e+00> : vector<16x16xf32>
    %194 = tpu.matmul %189, %193, %cst_102 {dimension_numbers = #tpu.dot_dimension_numbers<[1], [0], [0], [1], [0, 0, 1, 1], [], []>} : vector<16x16xf32>, vector<16x16xf32>, vector<16x16xf32> -> vector<16x16xf32>
    %195 = vector.extract_strided_slice %190 {offsets = [32, 0], sizes = [16, 16], strides = [1, 1]} : vector<80x16xf32> to vector<16x16xf32>
    %cst_103 = arith.constant dense<0.000000e+00> : vector<16x16xf32>
    %196 = tpu.matmul %189, %195, %cst_103 {dimension_numbers = #tpu.dot_dimension_numbers<[1], [0], [0], [1], [0, 0, 1, 1], [], []>} : vector<16x16xf32>, vector<16x16xf32>, vector<16x16xf32> -> vector<16x16xf32>
    %197 = vector.extract_strided_slice %190 {offsets = [48, 0], sizes = [16, 16], strides = [1, 1]} : vector<80x16xf32> to vector<16x16xf32>
    %cst_104 = arith.constant dense<0.000000e+00> : vector<16x16xf32>
    %198 = tpu.matmul %189, %197, %cst_104 {dimension_numbers = #tpu.dot_dimension_numbers<[1], [0], [0], [1], [0, 0, 1, 1], [], []>} : vector<16x16xf32>, vector<16x16xf32>, vector<16x16xf32> -> vector<16x16xf32>
    %199 = vector.extract_strided_slice %190 {offsets = [64, 0], sizes = [16, 16], strides = [1, 1]} : vector<80x16xf32> to vector<16x16xf32>
    %cst_105 = arith.constant dense<0.000000e+00> : vector<16x16xf32>
    %200 = tpu.matmul %189, %199, %cst_105 {dimension_numbers = #tpu.dot_dimension_numbers<[1], [0], [0], [1], [0, 0, 1, 1], [], []>} : vector<16x16xf32>, vector<16x16xf32>, vector<16x16xf32> -> vector<16x16xf32>
    %201 = arith.mulf %192, %192 : vector<16x16xf32>
    %202 = arith.mulf %194, %194 : vector<16x16xf32>
    %203 = arith.mulf %192, %194 : vector<16x16xf32>
    %204 = arith.subf %196, %201 : vector<16x16xf32>
    %205 = arith.subf %198, %202 : vector<16x16xf32>
    %206 = arith.subf %200, %203 : vector<16x16xf32>
    %cst_106 = arith.constant 2.000000e+00 : f32
    %207 = vector.broadcast %cst_106 : f32 to vector<16x16xf32>
    %208 = arith.mulf %207, %206 : vector<16x16xf32>
    %cst_107 = arith.constant 8.99999984E-4 : f32
    %209 = vector.broadcast %cst_107 : f32 to vector<16x16xf32>
    %210 = arith.addf %208, %209 : vector<16x16xf32>
    %211 = arith.addf %204, %205 : vector<16x16xf32>
    %cst_108 = arith.constant 8.99999984E-4 : f32
    %212 = vector.broadcast %cst_108 : f32 to vector<16x16xf32>
    %213 = arith.addf %211, %212 : vector<16x16xf32>
    %214 = arith.divf %210, %213 : vector<16x16xf32>
    %215 = arith.mulf %214, %214 : vector<16x16xf32>
    %216 = arith.mulf %185, %215 : vector<16x16xf32>
    %c4 = arith.constant 4 : index
    %c0_109 = arith.constant 0 : index
    %c0_110 = arith.constant 0 : index
    %217 = vector.load %arg3[%c4, %c0_109, %c0_110] : memref<5x16x16xf32, #tpu.memory_space<vmem>>, vector<1x16x16xf32>
    %218 = vector.shape_cast %217 : vector<1x16x16xf32> to vector<16x16xf32>
    %c4_111 = arith.constant 4 : index
    %c0_112 = arith.constant 0 : index
    %c0_113 = arith.constant 0 : index
    %219 = vector.load %arg4[%c4_111, %c0_112, %c0_113] : memref<5x16x16xf32, #tpu.memory_space<vmem>>, vector<1x16x16xf32>
    %220 = vector.shape_cast %219 : vector<1x16x16xf32> to vector<16x16xf32>
    %221 = tpu.concatenate %23, %31 in 0 : vector<80x16xf32>, vector<16x16xf32> -> vector<96x16xf32>
    %cst_114 = arith.constant dense<0.000000e+00> : vector<96x16xf32>
    %222 = tpu.matmul %221, %218, %cst_114 {dimension_numbers = #tpu.dot_dimension_numbers<[1], [0], [0], [1], [0, 0, 1, 1], [], []>} : vector<96x16xf32>, vector<16x16xf32>, vector<96x16xf32> -> vector<96x16xf32>
    %223 = vector.extract_strided_slice %222 {offsets = [0, 0], sizes = [16, 16], strides = [1, 1]} : vector<96x16xf32> to vector<16x16xf32>
    %cst_115 = arith.constant dense<0.000000e+00> : vector<16x16xf32>
    %224 = tpu.matmul %220, %223, %cst_115 {dimension_numbers = #tpu.dot_dimension_numbers<[1], [0], [0], [1], [0, 0, 1, 1], [], []>} : vector<16x16xf32>, vector<16x16xf32>, vector<16x16xf32> -> vector<16x16xf32>
    %225 = vector.extract_strided_slice %222 {offsets = [16, 0], sizes = [16, 16], strides = [1, 1]} : vector<96x16xf32> to vector<16x16xf32>
    %cst_116 = arith.constant dense<0.000000e+00> : vector<16x16xf32>
    %226 = tpu.matmul %220, %225, %cst_116 {dimension_numbers = #tpu.dot_dimension_numbers<[1], [0], [0], [1], [0, 0, 1, 1], [], []>} : vector<16x16xf32>, vector<16x16xf32>, vector<16x16xf32> -> vector<16x16xf32>
    %227 = vector.extract_strided_slice %222 {offsets = [32, 0], sizes = [16, 16], strides = [1, 1]} : vector<96x16xf32> to vector<16x16xf32>
    %cst_117 = arith.constant dense<0.000000e+00> : vector<16x16xf32>
    %228 = tpu.matmul %220, %227, %cst_117 {dimension_numbers = #tpu.dot_dimension_numbers<[1], [0], [0], [1], [0, 0, 1, 1], [], []>} : vector<16x16xf32>, vector<16x16xf32>, vector<16x16xf32> -> vector<16x16xf32>
    %229 = vector.extract_strided_slice %222 {offsets = [48, 0], sizes = [16, 16], strides = [1, 1]} : vector<96x16xf32> to vector<16x16xf32>
    %cst_118 = arith.constant dense<0.000000e+00> : vector<16x16xf32>
    %230 = tpu.matmul %220, %229, %cst_118 {dimension_numbers = #tpu.dot_dimension_numbers<[1], [0], [0], [1], [0, 0, 1, 1], [], []>} : vector<16x16xf32>, vector<16x16xf32>, vector<16x16xf32> -> vector<16x16xf32>
    %231 = vector.extract_strided_slice %222 {offsets = [64, 0], sizes = [16, 16], strides = [1, 1]} : vector<96x16xf32> to vector<16x16xf32>
    %cst_119 = arith.constant dense<0.000000e+00> : vector<16x16xf32>
    %232 = tpu.matmul %220, %231, %cst_119 {dimension_numbers = #tpu.dot_dimension_numbers<[1], [0], [0], [1], [0, 0, 1, 1], [], []>} : vector<16x16xf32>, vector<16x16xf32>, vector<16x16xf32> -> vector<16x16xf32>
    %233 = vector.extract_strided_slice %222 {offsets = [80, 0], sizes = [16, 16], strides = [1, 1]} : vector<96x16xf32> to vector<16x16xf32>
    %cst_120 = arith.constant dense<0.000000e+00> : vector<16x16xf32>
    %234 = tpu.matmul %220, %233, %cst_120 {dimension_numbers = #tpu.dot_dimension_numbers<[1], [0], [0], [1], [0, 0, 1, 1], [], []>} : vector<16x16xf32>, vector<16x16xf32>, vector<16x16xf32> -> vector<16x16xf32>
    %235 = arith.mulf %224, %224 : vector<16x16xf32>
    %236 = arith.mulf %226, %226 : vector<16x16xf32>
    %237 = arith.mulf %224, %226 : vector<16x16xf32>
    %238 = arith.subf %228, %235 : vector<16x16xf32>
    %239 = arith.subf %230, %236 : vector<16x16xf32>
    %240 = arith.subf %232, %237 : vector<16x16xf32>
    %cst_121 = arith.constant 2.000000e+00 : f32
    %241 = vector.broadcast %cst_121 : f32 to vector<16x16xf32>
    %242 = arith.mulf %241, %240 : vector<16x16xf32>
    %cst_122 = arith.constant 8.99999984E-4 : f32
    %243 = vector.broadcast %cst_122 : f32 to vector<16x16xf32>
    %244 = arith.addf %242, %243 : vector<16x16xf32>
    %245 = arith.addf %238, %239 : vector<16x16xf32>
    %cst_123 = arith.constant 8.99999984E-4 : f32
    %246 = vector.broadcast %cst_123 : f32 to vector<16x16xf32>
    %247 = arith.addf %245, %246 : vector<16x16xf32>
    %248 = arith.divf %244, %247 : vector<16x16xf32>
    %249 = arith.mulf %248, %248 : vector<16x16xf32>
    %250 = arith.mulf %249, %248 : vector<16x16xf32>
    %251 = arith.mulf %216, %250 : vector<16x16xf32>
    %cst_124 = arith.constant 2.000000e+00 : f32
    %252 = vector.broadcast %cst_124 : f32 to vector<16x16xf32>
    %253 = arith.mulf %252, %237 : vector<16x16xf32>
    %cst_125 = arith.constant 9.99999974E-5 : f32
    %254 = vector.broadcast %cst_125 : f32 to vector<16x16xf32>
    %255 = arith.addf %253, %254 : vector<16x16xf32>
    %256 = arith.addf %235, %236 : vector<16x16xf32>
    %cst_126 = arith.constant 9.99999974E-5 : f32
    %257 = vector.broadcast %cst_126 : f32 to vector<16x16xf32>
    %258 = arith.addf %256, %257 : vector<16x16xf32>
    %259 = arith.divf %255, %258 : vector<16x16xf32>
    %260 = arith.mulf %259, %259 : vector<16x16xf32>
    %261 = arith.mulf %260, %259 : vector<16x16xf32>
    %cst_127 = arith.constant 0.333333343 : f32
    %262 = vector.broadcast %cst_127 : f32 to vector<16x16xf32>
    %263 = arith.mulf %234, %262 : vector<16x16xf32>
    %264 = arith.mulf %261, %251 : vector<16x16xf32>
    %cst_128 = arith.constant 1.000000e+00 : f32
    %265 = vector.broadcast %cst_128 : f32 to vector<16x16xf32>
    %266 = arith.subf %265, %264 : vector<16x16xf32>
    %cst_129 = arith.constant 5.000000e+00 : f32
    %267 = vector.broadcast %cst_129 : f32 to vector<16x16xf32>
    %268 = arith.mulf %267, %266 : vector<16x16xf32>
    %cst_130 = arith.constant 1.950000e+02 : f32
    %269 = vector.broadcast %cst_130 : f32 to vector<16x16xf32>
    %270 = arith.mulf %269, %263 : vector<16x16xf32>
    %271 = arith.addf %268, %270 : vector<16x16xf32>
    %cst_131 = arith.constant dense<0.000000e+00> : vector<16xf32>
    %272 = vector.multi_reduction <add>, %271, %cst_131 [1] : vector<16x16xf32> to vector<16xf32>
    %273 = vector.shape_cast %272 : vector<16xf32> to vector<16x1xf32>
    %274 = vector.shape_cast %273 : vector<16x1xf32> to vector<1x16x1xf32>
    %c0_132 = arith.constant 0 : index
    %c0_133 = arith.constant 0 : index
    %c0_134 = arith.constant 0 : index
    %275 = vector.load %arg5[%c0_132, %c0_133, %c0_134] : memref<1x16x1xf32, #tpu.memory_space<vmem>>, vector<1x16x1xf32>
    tpu.vector_store %arg5[%c0_132, %c0_133, %c0_134], %274 {strides = array<i32>} : memref<1x16x1xf32, #tpu.memory_space<vmem>>, vector<1x16x1xf32>,
    return
  }
  func.func @transform_0(%arg0: i32) -> (i32, i32, i32, i32) {
    %c0_i32 = arith.constant 0 : i32
    %c0_i32_0 = arith.constant 0 : i32
    %c0_i32_1 = arith.constant 0 : i32
    %c0_i32_2 = arith.constant 0 : i32
    return %arg0, %c0_i32, %c0_i32_0, %c0_i32_1 : i32, i32, i32, i32
  }
  func.func @transform_1(%arg0: i32) -> (i32, i32, i32, i32) {
    %c0_i32 = arith.constant 0 : i32
    %c0_i32_0 = arith.constant 0 : i32
    %c0_i32_1 = arith.constant 0 : i32
    %c0_i32_2 = arith.constant 0 : i32
    return %arg0, %c0_i32, %c0_i32_0, %c0_i32_1 : i32, i32, i32, i32
  }
  func.func @transform_2(%arg0: i32) -> (i32, i32, i32) {
    %c0_i32 = arith.constant 0 : i32
    %c0_i32_0 = arith.constant 0 : i32
    %c0_i32_1 = arith.constant 0 : i32
    %c0_i32_2 = arith.constant 0 : i32
    return %c0_i32, %c0_i32_0, %c0_i32_1 : i32, i32, i32
  }
  func.func @transform_3(%arg0: i32) -> (i32, i32, i32) {
    %c0_i32 = arith.constant 0 : i32
    %c0_i32_0 = arith.constant 0 : i32
    %c0_i32_1 = arith.constant 0 : i32
    %c0_i32_2 = arith.constant 0 : i32
    return %c0_i32, %c0_i32_0, %c0_i32_1 : i32, i32, i32
  }
  func.func @transform_4(%arg0: i32) -> (i32, i32, i32) {
    %c0_i32 = arith.constant 0 : i32
    %c0_i32_0 = arith.constant 0 : i32
    %c0_i32_1 = arith.constant 0 : i32
    return %arg0, %c0_i32, %c0_i32_0 : i32, i32, i32
  }
}

</mosaic_0001>

<bundles_post_ra>
// kernel: ms_ssim_l1_loss.1
= control target key start
LH: loop header
LB: loop body
LE: loop exit
PB: predicated region body
PF: predicated region fallthrough
CT: control target
= control target key end

     0   :  { %9 = vsyncpa [#allocation3], 0  ;;  %s5931_s0 = inlined_call_operand.hbm [shape: f32[2,3,16,16], index: 0, kind: input, shape index: {}]   ;;  %s5932_s1 = inlined_call_operand.hbm [shape: f32[2,3,16,16], index: 1, kind: input, shape index: {}]   ;;  %s5933_s2 = inlined_call_operand.hbm [shape: f32[5,16,16], index: 2, kind: input, shape index: {}, may-alias: {2,3}]   ;;  %s5934_s3 = inlined_call_operand.hbm [shape: f32[5,16,16], index: 3, kind: input, shape index: {}, may-alias: {2,3}]   ;;  %s5935_s4 = inlined_call_operand.vmem [shape: f32[2,16,1], index: 4, kind: output, shape index: {}]  }
   0x1   :  { %11 = vsyncpa [#allocation3 + $0x1], 0 }
   0x2   :  { %12 = vsyncpa [#allocation5], 0 }
   0x3   :  { %14 = vsyncpa [#allocation5 + $0x1], 0 }
   0x4   :  { %15 = vsyncpa [#allocation8], 0  ;;  %s5425_s15 = smov 0   ;;  %s5427_s16 = smov 0  }
   0x5   :  { %s5429_s17 = smov 0   ;;  %s5431_s18 = smov 0  }
   0x6 LB: > { %s5444_s19 = sadd.s32 4294967295, %s5392_s18   ;;  %p41_p0 = scmp.ne.s32.totalorder %s5384_s16, %s5380_s15  ;;  %s5392_s18 = sphi %s5431_s18, %s5950_s18   ;;  %s5388_s17 = sphi %s5429_s17, %s5949_s17   ;;  %s5384_s16 = sphi %s5427_s16, %s5948_s16   ;;  %s5380_s15 = sphi %s5425_s15, %s5947_s15  }
   0x7   : > { %p5936_p1 = scmp.eq.s32.totalorder %s5444_s19, 0  ;;  %p4350_p2 = scmp.ge.s32.totalorder %s5392_s18, 1 }
   0x8   : > { %p146_p3 = scmp.lt.s32.totalorder %s5392_s18, 3  ;;  %s5394_s22 = smov [#allocation6]  }
   0x9   : > { %p5452_p4 = por %p5936_p1, %p41_p0  ;;  %s158_s23 = sshll.u32 %s5394_s22, 4  ;;  %s159_s23 = int_to_ptr.vmem [resolvable:$true] %s158_s23 }
   0xa   : > { %p5456_p5 = pnand %p4350_p2, %p146_p3  ;;  %s5395_s25 = smov [#allocation7]  }
   0xb   : > { %s5938_s20 = scalar_select %p5452_p4, 1, 0 }
   0xc   : > { %p5151_p6 = pneg %p5456_p5  ;;  %s171_s26 = sshll.u32 %s5395_s25, 4  ;;  %s172_s26 = int_to_ptr.vmem [resolvable:$true] %s171_s26 }
   0xd   : > { %s5249_s27 = scalar_lea.vmem %s159_s23, 1280  ;;  %p5257_p12 = scmp.lt.s32.totalorder %s159_s23, %s159_s23 }
   0xe   : > { %p5464_p7 = pnand %p5151_p6, %p5936_p1  ;;  %p5250_p9 = scmp.ne.s32.totalorder %s159_s23, %s5249_s27 }
   0xf   : > { %p5258_p13 = scmp.lt.s32.totalorder %s5249_s27, %s5249_s27 }
  0x10   : > { %p5240_p8 = pneg %p5464_p7 }
  0x11   : > { %p5259_p0 = por %p5258_p13, %p5257_p12 }
  0x12   : > { %p5252_p10 = pnand %p5250_p9, %p5240_p8 }
  0x14   : > { %p5253_p11 = pneg %p5252_p10 }
  0x16   : > { %p5260_p2 = pnand %p5259_p0, %p5253_p11 }
  0x18   : > { %5263 = shalt.err (!%p5260_p2)
}
  0x19   : > { %s5396_s28 = smov 128   ;;  %s5397_s29 = smov 8  }
  0x1a   : > { %5154 = dma.hbm_to_vmem [thread:$0]  (!%p5464_p7), %s5933_s2, 1280, %s159_s23, [#allocation5], %s5396_s28, %s5396_s28, %s5397_s29  }
  0x1b   : > { %s5275_s6 = scalar_lea.vmem %s172_s26, 1280  ;;  %p5283_p10 = scmp.lt.s32.totalorder %s172_s26, %s172_s26 }
  0x1c   : > { %p5276_p3 = scmp.ne.s32.totalorder %s172_s26, %s5275_s6  ;;  %p5284_p11 = scmp.lt.s32.totalorder %s5275_s6, %s5275_s6 }
  0x1e   : > { %p5278_p6 = pnand %p5276_p3, %p5240_p8  ;;  %p5285_p12 = por %p5284_p11, %p5283_p10 }
  0x20   : > { %p5279_p9 = pneg %p5278_p6 }
  0x22   : > { %p5286_p13 = pnand %p5285_p12, %p5279_p9 }
  0x24   : > { %5289 = shalt.err (!%p5286_p13)
}
  0x25   : > { %5157 = dma.hbm_to_vmem [thread:$0]  (!%p5464_p7), %s5934_s3, 1280, %s172_s26, [#allocation8], %s5396_s28, %s5396_s28, %s5397_s29  }
  0x26   : > { %s5493_s9 = sadd.s32 1, %s5392_s18   ;;  %s28_s10 = sadd.s32 1, %s5388_s17 }
  0x27   : > { %s25_s11 = ssub.s32 %s5392_s18, %s5493_s9  ;;  %p35_p8 = scmp.ne.s32.totalorder %s5388_s17, %s5384_s16 }
  0x28   : > { %p26_p0 = scmp.eq.s32.totalorder %s25_s11, 0  ;;  %p36_p2 = scmp.eq.s32.totalorder %s5392_s18, 0 }
  0x29   : > { %p5167_p3 = scmp.lt.s32.totalorder %s5392_s18, 2  ;;  %s185_s12 = sand.u32 1, %s5388_s17  }
  0x2a   : > { %s5504_s13 = scalar_select %p26_p0, %s5388_s17, %s28_s10  }
  0x2b   : > { %p37_p6 = por %p36_p2, %p35_p8  ;;  %s5506_s14 = smul.u32 48, %s185_s12 }
  0x2c   : > { %s206_s15 = sand.u32 1, %s5392_s18   ;;  %s5135_s22 = smul.u32 768, %s5392_s18 }
  0x2d   : > { %p5510_p9 = pnand %p5167_p3, %p37_p6  ;;  %s189_s27 = scalar_lea.vmem [#allocation2], %s5506_s14 }
  0x2e   : > { %s5519_s26 = scalar_lea.hbm %s5931_s0, %s5135_s22  ;;  %s196_s30 = sshll.u32 %s189_s27, 4  ;;  %s5522_s30 = int_to_ptr.vmem [resolvable:$true] %s196_s30 }
  0x2f   : > { %s5524_s5 = scalar_lea.sflag [#allocation3], %s185_s12  ;;  %s5290_s6 = scalar_lea.hbm %s5519_s26, 768 }
  0x30   : > { %p5291_p7 = scmp.ne.s32.totalorder %s5519_s26, %s5290_s6  ;;  %p5292_p10 = pneg %p5510_p9 }
  0x31   : > { %s5295_s10 = scalar_lea.hbm %s5931_s0, 1536  ;;  %p5296_p13 = scmp.lt.s32.totalorder %s5519_s26, %s5931_s0 }
  0x32   : > { %p5293_p11 = pnand %p5292_p10, %p5291_p7  ;;  %p5297_p8 = scmp.lt.s32.totalorder %s5295_s10, %s5290_s6 }
  0x34   : > { %p5294_p12 = pneg %p5293_p11  ;;  %p5298_p0 = por %p5297_p8, %p5296_p13 }
  0x36   : > { %p5299_p2 = pnand %p5298_p0, %p5294_p12 }
  0x38   : > { %5302 = shalt.err (!%p5299_p2)
}
  0x39   : > { %s5303_s12 = scalar_lea.vmem %s5522_s30, 768  ;;  %s5398_s25 = smov [#allocation2]  }
  0x3a   : > { %p5304_p3 = scmp.ne.s32.totalorder %s5522_s30, %s5303_s12  ;;  %s5308_s27 = sshll.u32 %s5398_s25, 4  ;;  %s5309_s27 = int_to_ptr.vmem [resolvable:$false] %s5308_s27 }
  0x3b   : > { %s5310_s7 = scalar_lea.vmem %s5309_s27, 1536  ;;  %p5311_p11 = scmp.lt.s32.totalorder %s5522_s30, %s5309_s27 }
  0x3c   : > { %p5306_p6 = pnand %p5304_p3, %p5292_p10  ;;  %p5312_p1 = scmp.lt.s32.totalorder %s5310_s7, %s5303_s12 }
  0x3e   : > { %p5307_p7 = pneg %p5306_p6  ;;  %p5313_p4 = por %p5312_p1, %p5311_p11 }
  0x40   : > { %p5314_p13 = pnand %p5313_p4, %p5307_p7 }
  0x42   : > { %5317 = shalt.err (!%p5314_p13)
}
  0x43   : > { %5161 = dma.hbm_to_vmem [thread:$0]  (!%p5510_p9), %s5519_s26, 768, %s5522_s30, %s5524_s5, %s5396_s28, %s5396_s28, %s5397_s29  }
  0x44   : > { %s5559_s10 = scalar_lea.hbm %s5932_s1, %s5135_s22  ;;  %s210_s11 = scalar_lea.vmem [#allocation4], %s5506_s14 }
  0x45   : > { %s217_s24 = sshll.u32 %s210_s11, 4  ;;  %s207_s12 = scalar_lea.sflag [#allocation5], %s206_s15  ;;  %s5562_s24 = int_to_ptr.vmem [resolvable:$true] %s217_s24 }
  0x46   : > { %s5318_s25 = scalar_lea.hbm %s5559_s10, 768  ;;  %s5323_s22 = scalar_lea.hbm %s5932_s1, 1536 }
  0x47   : > { %p5319_p1 = scmp.ne.s32.totalorder %s5559_s10, %s5318_s25  ;;  %p5324_p8 = scmp.lt.s32.totalorder %s5559_s10, %s5932_s1 }
  0x48   : > { %p5325_p0 = scmp.lt.s32.totalorder %s5323_s22, %s5318_s25 }
  0x49   : > { %p5321_p4 = pnand %p5319_p1, %p5292_p10 }
  0x4a   : > { %p5326_p2 = por %p5325_p0, %p5324_p8 }
  0x4b   : > { %p5322_p12 = pneg %p5321_p4 }
  0x4d   : > { %p5327_p3 = pnand %p5326_p2, %p5322_p12 }
  0x4f   : > { %5330 = shalt.err (!%p5327_p3)
}
  0x50   : > { %s5331_s18 = scalar_lea.vmem %s5562_s24, 768  ;;  %s5399_s14 = smov [#allocation4]  }
  0x51   : > { %p5332_p6 = scmp.ne.s32.totalorder %s5562_s24, %s5331_s18  ;;  %s5336_s15 = sshll.u32 %s5399_s14, 4  ;;  %s5337_s15 = int_to_ptr.vmem [resolvable:$false] %s5336_s15 }
  0x52   : > { %s5338_s7 = scalar_lea.vmem %s5337_s15, 1536  ;;  %p5339_p13 = scmp.lt.s32.totalorder %s5562_s24, %s5337_s15 }
  0x53   : > { %p5334_p7 = pnand %p5332_p6, %p5292_p10  ;;  %p5340_p1 = scmp.lt.s32.totalorder %s5338_s7, %s5331_s18 }
  0x55   : > { %p5335_p11 = pneg %p5334_p7  ;;  %p5341_p4 = por %p5340_p1, %p5339_p13 }
  0x57   : > { %p5342_p8 = pnand %p5341_p4, %p5335_p11 }
  0x59   : > { %5345 = shalt.err (!%p5342_p8)
}
  0x5a   : > { %5164 = dma.hbm_to_vmem [thread:$0]  (!%p5510_p9), %s5559_s10, 768, %s5562_s24, %s207_s12, %s5396_s28, %s5396_s28, %s5397_s29  }
  0x5b   : > { %229 = sbr.rel (%p5456_p5) target bundleno = 815 (0x32f), region = 36  ;;  %s231_s6 = sand.u32 (!%p5456_p5), 1, %s5384_s16  }
  0x5c   : > { %s5138_s8 = smul.u32 (!%p5456_p5), 48, %s231_s6  ;;  %s232_s11 = scalar_lea.sflag (!%p5456_p5), [#allocation3], %s231_s6 }
  0x5d   : > { %p5942_p10 = scmp.ne.s32.totalorder (!%p5456_p5), %s5938_s20, 0 }
  0x5e   : > { %s5594_s25 = scalar_lea.vmem (!%p5456_p5), [#allocation2], %s5138_s8 }
  0x60   : > { %5363 = dma.done.wait (%p5942_p10), %s232_s11, 768  }
  0x61   : > { %5365 = vsyncadd (%p5942_p10), %s232_s11, 4294966528  ;;  %s240_s23 = sand.u32 1, %s5444_s19   ;;  %s5601_s28 = scalar_lea.vmem [#allocation4], %s5138_s8 }
  0x62   : > { %s241_s26 = scalar_lea.sflag [#allocation5], %s240_s23 }
  0x63   : > { %5367 = dma.done.wait (%p5942_p10), %s241_s26, 768  }
  0x64   : > { %5369 = vsyncadd (%p5942_p10), %s241_s26, 4294966528  ;;  %p5943_p5 = scmp.eq.s32.totalorder %s5444_s19, 0 }
  0x66   : > { %5371 = dma.done.wait (%p5943_p5), [#allocation5], 1280   ;;  %p5944_p9 = pmov %p5943_p5 }
  0x67   : > { %p5945_p12 = pmov %p5943_p5 }
  0x68   : > { %5373 = vsyncadd (%p5944_p9), [#allocation5], 4294966016 }
  0x69   : > { %5375 = dma.done.wait (%p5945_p12), [#allocation8], 1280   ;;  %p5946_p0 = pmov %p5943_p5 }
  0x6a   : > { %vm341_vm0 = vcmask 130048   ;;  %v338_v0 = vld [vmem:[#allocation6 + $0x8] sm:$0xff]  ;;  %v337_v1 = vld [vmem:[#allocation6] sm:$0xff]  ;;  %v898_v4 = vld [vmem:[#allocation6 + $0x18] sm:$0xff]  ;;  %p282_p2 = scmp.lt.s32.totalorder %s5444_s19, 1  ;;  %vm4237_vm1 = vcmask 7168  }
  0x6b   : > { %5377 = vsyncadd (%p5946_p0), [#allocation8], 4294966016  ;;  %v5616_v2 = vld [vmem:[%s5594_s25] sm:$0xff]  ;;  %4746 = vmatprep.subr.mxu0 %v338_v0  ;;  %v5621_v3 = vld [vmem:[%s5594_s25 + $0x8] sm:$0xff] }
  0x6c   : > { %4750 = vmatprep.mubr.msk.f32.mxu0 %vm341_vm0, %v5616_v2  ;;  %4747 = vmatpush3.msra.mxu0 %v338_v0  ;;  %v5624_v5 = vld [vmem:[%s5601_s28] sm:$0xff]  ;;  %v5631_v7 = vld [vmem:[%s5601_s28 + $0x8] sm:$0xff]  ;;  %v303_v8 = vmul.f32 %v5616_v2, %v5616_v2  ;;  %v304_v9 = vmul.f32 %v5621_v3, %v5621_v3  ;;  %v5671_v17 = vld [vmem:[%s5594_s25 + $0x10] sm:$0xff]  ;;  %s5952_s19 = smov (!%p282_p2, %s5444_s19), 1 }
  0x6d   : > { %4748 = vmatprep.subr.mxu0 %v337_v1  ;;  %v897_v6 = vld [vmem:[#allocation6 + $0x10] sm:$0xff]  ;;  %v305_v10 = vmul.f32 %v5624_v5, %v5624_v5  ;;  %v306_v11 = vmul.f32 %v5631_v7, %v5631_v7  ;;  %v321_v12 = vsub.f32 %v5616_v2, %v5624_v5  ;;  %v307_v13 = vmul.f32 %v5624_v5, %v5616_v2  ;;  %v1974_v16 = vld [vmem:[#allocation6 + $0x28] sm:$0xff]  ;;  %v1973_v20 = vld [vmem:[#allocation6 + $0x20] sm:$0xff]  ;;  %s4515_s20 = sshll.u32 %s5952_s19, 4 }
  0x6e   : > { %4749 = vmatpush3.msra.mxu0 %v337_v1  ;;  %v322_v14 = vsub.f32 %v5621_v3, %v5631_v7  ;;  %v308_v15 = vmul.f32 %v5631_v7, %v5621_v3  ;;  %v5677_v18 = vld [vmem:[%s5594_s25 + $0x18] sm:$0xff]  ;;  %v5680_v19 = vld [vmem:[%s5601_s28 + $0x10] sm:$0xff]  ;;  %v309_v22 = vmul.f32 %v5671_v17, %v5671_v17  ;;  %v4363_v32 = vld [vmem:[%s5594_s25 + $0x20] sm:$0xff]  ;;  %s286_s10 = scalar_lea.vmem %s5935_s4, %s4515_s20 }
  0x6f   : > { %4751 = vmatmul.mubr.msk.f32.vlgmr.msra.gmra.mxu0 %vm341_vm0, %v5621_v3  ;;  %4800 = vmatprep.subr.mxu0 %v898_v4  ;;  %v5687_v21 = vld [vmem:[%s5601_s28 + $0x18] sm:$0xff]  ;;  %v310_v24 = vmul.f32 %v5677_v18, %v5677_v18  ;;  %v311_v25 = vmul.f32 %v5680_v19, %v5680_v19  ;;  %v313_v27 = vmul.f32 %v5680_v19, %v5671_v17  ;;  %v2505_v29 = vld [vmem:[#allocation6 + $0x30] sm:$0xff]  ;;  %v4364_v33 = vld [vmem:[%s5594_s25 + $0x28] sm:$0xff]  ;;  %v323_v45 = vand.u32 2147483647, %v321_v12 }
  0x70   : > { %4801 = vmatpush3.msra.mxu0 %v898_v4  ;;  %4753 = vmatprep.mubr.msk.f32.mxu0 %vm341_vm0, %v5624_v5  ;;  %v2506_v23 = vld [vmem:[#allocation6 + $0x38] sm:$0xff]  ;;  %v312_v26 = vmul.f32 %v5687_v21, %v5687_v21  ;;  %v314_v28 = vmul.f32 %v5687_v21, %v5677_v18  ;;  %v5718_v30 = vld [vmem:[#allocation7] sm:$0xff]  ;;  %v3582_v31 = vld [vmem:[#allocation6 + $0x48] sm:$0xff]  ;;  %v315_v37 = vmul.f32 %v4363_v32, %v4363_v32  ;;  %v324_v48 = vand.u32 2147483647, %v322_v14 }
  0x71   : > { %4802 = vmatprep.subr.mxu0 %v897_v6  ;;  %4769 = vmatprep.mubr.msk.f32.mxu1 %vm341_vm0, %v5718_v30  ;;  %v4367_v34 = vld [vmem:[%s5601_s28 + $0x20] sm:$0xff]  ;;  %v4368_v36 = vld [vmem:[%s5601_s28 + $0x28] sm:$0xff]  ;;  %v316_v38 = vmul.f32 %v4364_v33, %v4364_v33  ;;  %v325_v43 = vsub.f32 %v5671_v17, %v5680_v19  ;;  %v326_v44 = vsub.f32 %v5677_v18, %v5687_v21 }
  0x72   : > { %4803 = vmatpush3.msra.mxu0 %v897_v6  ;;  %v3581_v35 = vld [vmem:[#allocation6 + $0x40] sm:$0xff]  ;;  %v317_v39 = vmul.f32 %v4367_v34, %v4367_v34  ;;  %v318_v40 = vmul.f32 %v4368_v36, %v4368_v36  ;;  %v319_v41 = vmul.f32 %v4367_v34, %v4363_v32  ;;  %v320_v42 = vmul.f32 %v4368_v36, %v4364_v33  ;;  %v340_v59 = vld [vmem:[#allocation7 + $0x8] sm:$0xff] }
  0x73   : > { %4754 = vmatmul.mubr.msk.f32.gmra.mxu0 %vm341_vm0, %v5631_v7  ;;  %4854 = vmatprep.subr.mxu0 %v898_v4  ;;  %v327_v46 = vand.u32 2147483647, %v325_v43  ;;  %v331_v47 = vsub.f32 %v4363_v32, %v4367_v34  ;;  %v328_v49 = vand.u32 2147483647, %v326_v44  ;;  %v332_v50 = vsub.f32 %v4364_v33, %v4368_v36 }
  0x74   : > { %4756 = vmatprep.mubr.msk.f32.mxu0 %vm341_vm0, %v303_v8 }
  0x75   : > { %v329_v51 = vadd.f32 %v327_v46, %v323_v45  ;;  %v333_v52 = vand.u32 2147483647, %v331_v47  ;;  %v330_v53 = vadd.f32 %v328_v49, %v324_v48  ;;  %v334_v54 = vand.u32 2147483647, %v332_v50 }
  0x77   : > { %4757 = vmatmul.mubr.msk.f32.gmra.mxu0 %vm341_vm0, %v304_v9  ;;  %v335_v55 = vadd.f32 %v333_v52, %v329_v51  ;;  %v336_v56 = vadd.f32 %v334_v54, %v330_v53 }
  0x78   : > { %4759 = vmatprep.mubr.msk.f32.mxu0 %vm341_vm0, %v305_v10 }
  0x7b   : > { %4760 = vmatmul.mubr.msk.f32.gmra.mxu0 %vm341_vm0, %v306_v11 }
  0x7c   : > { %4762 = vmatprep.mubr.msk.f32.mxu0 %vm341_vm0, %v307_v13 }
  0x7f   : > { %4763 = vmatmul.mubr.msk.f32.gmra.mxu0 %vm341_vm0, %v308_v15 }
  0x80   : > { %4804 = vmatprep.mubr.msk.f32.mxu0 %vm341_vm0, %v5616_v2 }
  0x83   : > { %4805 = vmatmul.mubr.msk.f32.vlgmr.msra.gmra.mxu0 %vm341_vm0, %v5621_v3 }
  0x84   : > { %4855 = vmatpush3.msra.mxu0 %v898_v4  ;;  %4807 = vmatprep.mubr.msk.f32.mxu0 %vm341_vm0, %v5624_v5  ;;  %v5789_v4 = vld [vmem:[#allocation7 + $0x10] sm:$0xff] }
  0x85   : > { %4856 = vmatprep.subr.mxu0 %v897_v6 }
  0x86   : > { %4857 = vmatpush3.msra.mxu0 %v897_v6 }
  0x87   : > { %4808 = vmatmul.mubr.msk.f32.gmra.mxu0 %vm341_vm0, %v5631_v7  ;;  %4908 = vmatprep.subr.mxu0 %v1974_v16  ;;  %v5794_v7 = vld [vmem:[#allocation7 + $0x18] sm:$0xff] }
  0x88   : > { %4810 = vmatprep.mubr.msk.f32.mxu0 %vm341_vm0, %v303_v8 }
  0x8b   : > { %4811 = vmatmul.mubr.msk.f32.gmra.mxu0 %vm341_vm0, %v304_v9 }
  0x8c   : > { %4813 = vmatprep.mubr.msk.f32.mxu0 %vm341_vm0, %v305_v10 }
  0x8f   : > { %4814 = vmatmul.mubr.msk.f32.gmra.mxu0 %vm341_vm0, %v306_v11 }
  0x90   : > { %4816 = vmatprep.mubr.msk.f32.mxu0 %vm341_vm0, %v307_v13 }
  0x93   : > { %4817 = vmatmul.mubr.msk.f32.gmra.mxu0 %vm341_vm0, %v308_v15 }
  0x94   : > { %4858 = vmatprep.mubr.msk.f32.mxu0 %vm341_vm0, %v5671_v17 }
  0x97   : > { %4859 = vmatmul.mubr.msk.f32.vlgmr.msra.gmra.mxu0 %vm341_vm0, %v5677_v18 }
  0x98   : > { %4909 = vmatpush3.msra.mxu0 %v1974_v16  ;;  %4861 = vmatprep.mubr.msk.f32.mxu0 %vm341_vm0, %v5680_v19 }
  0x99   : > { %4910 = vmatprep.subr.mxu0 %v1973_v20 }
  0x9a   : > { %4911 = vmatpush3.msra.mxu0 %v1973_v20 }
  0x9b   : > { %4862 = vmatmul.mubr.msk.f32.gmra.mxu0 %vm341_vm0, %v5687_v21  ;;  %4962 = vmatprep.subr.mxu0 %v2506_v23 }
  0x9c   : > { %4864 = vmatprep.mubr.msk.f32.mxu0 %vm341_vm0, %v309_v22 }
  0x9f   : > { %4865 = vmatmul.mubr.msk.f32.gmra.mxu0 %vm341_vm0, %v310_v24 }
  0xa0   : > { %4867 = vmatprep.mubr.msk.f32.mxu0 %vm341_vm0, %v311_v25 }
  0xa3   : > { %4868 = vmatmul.mubr.msk.f32.gmra.mxu0 %vm341_vm0, %v312_v26 }
  0xa4   : > { %4870 = vmatprep.mubr.msk.f32.mxu0 %vm341_vm0, %v313_v27 }
  0xa7   : > { %4871 = vmatmul.mubr.msk.f32.gmra.mxu0 %vm341_vm0, %v314_v28 }
  0xa8   : > { %4912 = vmatprep.mubr.msk.f32.mxu0 %vm341_vm0, %v5671_v17 }
  0xab   : > { %4913 = vmatmul.mubr.msk.f32.vlgmr.msra.gmra.mxu0 %vm341_vm0, %v5677_v18 }
  0xac   : > { %4963 = vmatpush3.msra.mxu0 %v2506_v23  ;;  %4915 = vmatprep.mubr.msk.f32.mxu0 %vm341_vm0, %v5680_v19 }
  0xad   : > { %4964 = vmatprep.subr.mxu0 %v2505_v29 }
  0xae   : > { %4965 = vmatpush3.msra.mxu0 %v2505_v29 }
  0xaf   : > { %4916 = vmatmul.mubr.msk.f32.gmra.mxu0 %vm341_vm0, %v5687_v21  ;;  %5016 = vmatprep.subr.mxu0 %v2506_v23 }
  0xb0   : > { %4918 = vmatprep.mubr.msk.f32.mxu0 %vm341_vm0, %v309_v22 }
  0xb3   : > { %4919 = vmatmul.mubr.msk.f32.gmra.mxu0 %vm341_vm0, %v310_v24 }
  0xb4   : > { %4921 = vmatprep.mubr.msk.f32.mxu0 %vm341_vm0, %v311_v25 }
  0xb7   : > { %4922 = vmatmul.mubr.msk.f32.gmra.mxu0 %vm341_vm0, %v312_v26 }
  0xb8   : > { %4924 = vmatprep.mubr.msk.f32.mxu0 %vm341_vm0, %v313_v27 }
  0xbb   : > { %4925 = vmatmul.mubr.msk.f32.gmra.mxu0 %vm341_vm0, %v314_v28 }
  0xbc   : > { %4966 = vmatprep.mubr.msk.f32.mxu0 %vm341_vm0, %v5671_v17 }
  0xbf   : > { %4967 = vmatmul.mubr.msk.f32.vlgmr.msra.gmra.mxu0 %vm341_vm0, %v5677_v18 }
  0xc0   : > { %5017 = vmatpush3.msra.mxu0 %v2506_v23  ;;  %4969 = vmatprep.mubr.msk.f32.mxu0 %vm341_vm0, %v5680_v19 }
  0xc1   : > { %5018 = vmatprep.subr.mxu0 %v2505_v29 }
  0xc2   : > { %5019 = vmatpush3.msra.mxu0 %v2505_v29  ;;  %v1977_v29 = vld [vmem:[#allocation7 + $0x28] sm:$0xff] }
  0xc3   : > { %4970 = vmatmul.mubr.msk.f32.gmra.mxu0 %vm341_vm0, %v5687_v21  ;;  %5070 = vmatprep.subr.mxu0 %v3582_v31 }
  0xc4   : > { %4972 = vmatprep.mubr.msk.f32.mxu0 %vm341_vm0, %v309_v22 }
  0xc7   : > { %4973 = vmatmul.mubr.msk.f32.gmra.mxu0 %vm341_vm0, %v310_v24 }
  0xc8   : > { %4975 = vmatprep.mubr.msk.f32.mxu0 %vm341_vm0, %v311_v25 }
  0xcb   : > { %4976 = vmatmul.mubr.msk.f32.gmra.mxu0 %vm341_vm0, %v312_v26  ;;  %v1976_v26 = vld [vmem:[#allocation7 + $0x20] sm:$0xff] }
  0xcc   : > { %4978 = vmatprep.mubr.msk.f32.mxu0 %vm341_vm0, %v313_v27 }
  0xcf   : > { %4979 = vmatmul.mubr.msk.f32.gmra.mxu0 %vm341_vm0, %v314_v28 }
  0xd0   : > { %5020 = vmatprep.mubr.msk.f32.mxu0 %vm341_vm0, %v4363_v32 }
  0xd3   : > { %5021 = vmatmul.mubr.msk.f32.vlgmr.msra.gmra.mxu0 %vm341_vm0, %v4364_v33 }
  0xd4   : > { %5071 = vmatpush3.msra.mxu0 %v3582_v31  ;;  %5023 = vmatprep.mubr.msk.f32.mxu0 %vm341_vm0, %v4367_v34 }
  0xd5   : > { %5072 = vmatprep.subr.mxu0 %v3581_v35 }
  0xd6   : > { %5073 = vmatpush3.msra.mxu0 %v3581_v35 }
  0xd7   : > { %5024 = vmatmul.mubr.msk.f32.gmra.mxu0 %vm341_vm0, %v4368_v36 }
  0xd8   : > { %5026 = vmatprep.mubr.msk.f32.mxu0 %vm341_vm0, %v315_v37 }
  0xdb   : > { %5027 = vmatmul.mubr.msk.f32.gmra.mxu0 %vm341_vm0, %v316_v38 }
  0xdc   : > { %5029 = vmatprep.mubr.msk.f32.mxu0 %vm341_vm0, %v317_v39 }
  0xdf   : > { %5030 = vmatmul.mubr.msk.f32.gmra.mxu0 %vm341_vm0, %v318_v40 }
  0xe0   : > { %5032 = vmatprep.mubr.msk.f32.mxu0 %vm341_vm0, %v319_v41 }
  0xe3   : > { %5033 = vmatmul.mubr.msk.f32.gmra.mxu0 %vm341_vm0, %v320_v42 }
  0xe4   : > { %5074 = vmatprep.mubr.msk.f32.mxu0 %vm341_vm0, %v4363_v32 }
  0xe7   : > { %5075 = vmatmul.mubr.msk.f32.vlgmr.msra.gmra.mxu0 %vm341_vm0, %v4364_v33 }
  0xe8   : > { %5077 = vmatprep.mubr.msk.f32.mxu0 %vm341_vm0, %v4367_v34 }
  0xeb   : > { %5078 = vmatmul.mubr.msk.f32.gmra.mxu0 %vm341_vm0, %v4368_v36 }
  0xec   : > { %5080 = vmatprep.mubr.msk.f32.mxu0 %vm341_vm0, %v315_v37 }
  0xef   : > { %5081 = vmatmul.mubr.msk.f32.gmra.mxu0 %vm341_vm0, %v316_v38  ;;  %v5843_v38 = vld [vmem:[#allocation7 + $0x30] sm:$0xff] }
  0xf0   : > { %5083 = vmatprep.mubr.msk.f32.mxu0 %vm341_vm0, %v317_v39 }
  0xf3   : > { %5084 = vmatmul.mubr.msk.f32.gmra.mxu0 %vm341_vm0, %v318_v40 }
  0xf4   : > { %5086 = vmatprep.mubr.msk.f32.mxu0 %vm341_vm0, %v319_v41  ;;  %v5848_v41 = vld [vmem:[#allocation7 + $0x38] sm:$0xff] }
  0xf7   : > { %5087 = vmatmul.mubr.msk.f32.gmra.mxu0 %vm341_vm0, %v320_v42 }
  0xf8   : > { %5089 = vmatprep.mubr.msk.f32.mxu0 %vm341_vm0, %v335_v55 }
  0xfb   : > { %5090 = vmatmul.mubr.msk.f32.gmra.mxu0 %vm341_vm0, %v336_v56 }
 0x12f   : > { %v4752_v57 = vpop.f32.mrf.mxu0 }
 0x130   : > { %4765 = vmatprep.subr.mxu1 %v4752_v57 }
 0x131   : > { %v438_v58 = vpop.f32.mrf.mxu0  ;;  %4766 = vmatpush3.msra.mxu1 %v4752_v57 }
 0x132   : > { %4767 = vmatprep.subr.mxu1 %v438_v58 }
 0x133   : > { %v4755_v60 = vpop.f32.mrf.mxu0  ;;  %4768 = vmatpush3.msra.mxu1 %v438_v58 }
 0x134   : > { %4770 = vmatmul.mubr.msk.f32.vlgmr.msra.gmra.mxu1 %vm341_vm0, %v340_v59  ;;  %4772 = vmatprep.subr.mxu1 %v4755_v60 }
 0x135   : > { %v448_v61 = vpop.f32.mrf.mxu0  ;;  %4773 = vmatpush3.msra.mxu1 %v4755_v60  ;;  %4776 = vmatprep.mubr.msk.f32.mxu1 %vm341_vm0, %v5718_v30  ;;  %v3584_v60 = vld [vmem:[#allocation7 + $0x40] sm:$0xff] }
 0x136   : > { %4774 = vmatprep.subr.mxu1 %v448_v61 }
 0x137   : > { %v4758_v62 = vpop.f32.mrf.mxu0  ;;  %4775 = vmatpush3.msra.mxu1 %v448_v61 }
 0x138   : > { %4777 = vmatmul.mubr.msk.f32.vlgmr.msra.gmra.mxu1 %vm341_vm0, %v340_v59  ;;  %4779 = vmatprep.subr.mxu1 %v4758_v62 }
 0x139   : > { %v458_v63 = vpop.f32.mrf.mxu0  ;;  %4780 = vmatpush3.msra.mxu1 %v4758_v62  ;;  %4783 = vmatprep.mubr.msk.f32.mxu1 %vm341_vm0, %v5718_v30 }
 0x13a   : > { %4781 = vmatprep.subr.mxu1 %v458_v63 }
 0x13b   : > { %v4761_v0 = vpop.f32.mrf.mxu0  ;;  %4782 = vmatpush3.msra.mxu1 %v458_v63  ;;  %v3585_v63 = vld [vmem:[#allocation7 + $0x48] sm:$0xff] }
 0x13c   : > { %4784 = vmatmul.mubr.msk.f32.vlgmr.msra.gmra.mxu1 %vm341_vm0, %v340_v59  ;;  %4786 = vmatprep.subr.mxu1 %v4761_v0 }
 0x13d   : > { %v468_v1 = vpop.f32.mrf.mxu0  ;;  %4787 = vmatpush3.msra.mxu1 %v4761_v0  ;;  %4790 = vmatprep.mubr.msk.f32.mxu1 %vm341_vm0, %v5718_v30 }
 0x13e   : > { %4788 = vmatprep.subr.mxu1 %v468_v1 }
 0x13f   : > { %v4764_v2 = vpop.f32.mrf.mxu0  ;;  %4789 = vmatpush3.msra.mxu1 %v468_v1 }
 0x140   : > { %4791 = vmatmul.mubr.msk.f32.vlgmr.msra.gmra.mxu1 %vm341_vm0, %v340_v59  ;;  %4793 = vmatprep.subr.mxu1 %v4764_v2 }
 0x141   : > { %v478_v3 = vpop.f32.mrf.mxu0  ;;  %4794 = vmatpush3.msra.mxu1 %v4764_v2  ;;  %4797 = vmatprep.mubr.msk.f32.mxu1 %vm341_vm0, %v5718_v30 }
 0x142   : > { %4795 = vmatprep.subr.mxu1 %v478_v3 }
 0x143   : > { %4796 = vmatpush3.msra.mxu1 %v478_v3  ;;  %v4806_v5 = vpop.f32.mrf.mxu0 }
 0x144   : > { %4798 = vmatmul.mubr.msk.f32.vlgmr.msra.gmra.mxu1 %vm341_vm0, %v340_v59  ;;  %4819 = vmatprep.subr.mxu1 %v4806_v5 }
 0x145   : > { %v968_v6 = vpop.f32.mrf.mxu0  ;;  %4820 = vmatpush3.msra.mxu1 %v4806_v5  ;;  %4823 = vmatprep.mubr.msk.f32.mxu1 %vm341_vm0, %v5789_v4 }
 0x146   : > { %4821 = vmatprep.subr.mxu1 %v968_v6 }
 0x147   : > { %v4809_v8 = vpop.f32.mrf.mxu0  ;;  %4822 = vmatpush3.msra.mxu1 %v968_v6 }
 0x148   : > { %4824 = vmatmul.mubr.msk.f32.vlgmr.msra.gmra.mxu1 %vm341_vm0, %v5794_v7  ;;  %4826 = vmatprep.subr.mxu1 %v4809_v8 }
 0x149   : > { %v978_v9 = vpop.f32.mrf.mxu0  ;;  %4827 = vmatpush3.msra.mxu1 %v4809_v8  ;;  %4830 = vmatprep.mubr.msk.f32.mxu1 %vm341_vm0, %v5789_v4 }
 0x14a   : > { %4828 = vmatprep.subr.mxu1 %v978_v9 }
 0x14b   : > { %v4812_v10 = vpop.f32.mrf.mxu0  ;;  %4829 = vmatpush3.msra.mxu1 %v978_v9 }
 0x14c   : > { %4831 = vmatmul.mubr.msk.f32.vlgmr.msra.gmra.mxu1 %vm341_vm0, %v5794_v7  ;;  %4833 = vmatprep.subr.mxu1 %v4812_v10 }
 0x14d   : > { %v988_v11 = vpop.f32.mrf.mxu0  ;;  %4834 = vmatpush3.msra.mxu1 %v4812_v10  ;;  %4837 = vmatprep.mubr.msk.f32.mxu1 %vm341_vm0, %v5789_v4 }
 0x14e   : > { %4835 = vmatprep.subr.mxu1 %v988_v11 }
 0x14f   : > { %v4815_v12 = vpop.f32.mrf.mxu0  ;;  %4836 = vmatpush3.msra.mxu1 %v988_v11 }
 0x150   : > { %4838 = vmatmul.mubr.msk.f32.vlgmr.msra.gmra.mxu1 %vm341_vm0, %v5794_v7  ;;  %4840 = vmatprep.subr.mxu1 %v4815_v12 }
 0x151   : > { %v998_v13 = vpop.f32.mrf.mxu0  ;;  %4841 = vmatpush3.msra.mxu1 %v4815_v12  ;;  %4844 = vmatprep.mubr.msk.f32.mxu1 %vm341_vm0, %v5789_v4 }
 0x152   : > { %4842 = vmatprep.subr.mxu1 %v998_v13 }
 0x153   : > { %v4818_v14 = vpop.f32.mrf.mxu0  ;;  %4843 = vmatpush3.msra.mxu1 %v998_v13 }
 0x154   : > { %4845 = vmatmul.mubr.msk.f32.vlgmr.msra.gmra.mxu1 %vm341_vm0, %v5794_v7  ;;  %4847 = vmatprep.subr.mxu1 %v4818_v14 }
 0x155   : > { %v1008_v15 = vpop.f32.mrf.mxu0  ;;  %4848 = vmatpush3.msra.mxu1 %v4818_v14  ;;  %4851 = vmatprep.mubr.msk.f32.mxu1 %vm341_vm0, %v5789_v4 }
 0x156   : > { %4849 = vmatprep.subr.mxu1 %v1008_v15 }
 0x157   : > { %4850 = vmatpush3.msra.mxu1 %v1008_v15  ;;  %v4860_v16 = vpop.f32.mrf.mxu0 }
 0x158   : > { %4852 = vmatmul.mubr.msk.f32.vlgmr.msra.gmra.mxu1 %vm341_vm0, %v5794_v7  ;;  %4873 = vmatprep.subr.mxu1 %v4860_v16 }
 0x159   : > { %v1522_v17 = vpop.f32.mrf.mxu0  ;;  %4874 = vmatpush3.msra.mxu1 %v4860_v16  ;;  %4877 = vmatprep.mubr.msk.f32.mxu1 %vm341_vm0, %v5789_v4 }
 0x15a   : > { %4875 = vmatprep.subr.mxu1 %v1522_v17 }
 0x15b   : > { %v4863_v18 = vpop.f32.mrf.mxu0  ;;  %4876 = vmatpush3.msra.mxu1 %v1522_v17 }
 0x15c   : > { %4878 = vmatmul.mubr.msk.f32.vlgmr.msra.gmra.mxu1 %vm341_vm0, %v5794_v7  ;;  %4880 = vmatprep.subr.mxu1 %v4863_v18 }
 0x15d   : > { %v1532_v19 = vpop.f32.mrf.mxu0  ;;  %4881 = vmatpush3.msra.mxu1 %v4863_v18  ;;  %4884 = vmatprep.mubr.msk.f32.mxu1 %vm341_vm0, %v5789_v4 }
 0x15e   : > { %4882 = vmatprep.subr.mxu1 %v1532_v19 }
 0x15f   : > { %v4866_v20 = vpop.f32.mrf.mxu0  ;;  %4883 = vmatpush3.msra.mxu1 %v1532_v19 }
 0x160   : > { %4885 = vmatmul.mubr.msk.f32.vlgmr.msra.gmra.mxu1 %vm341_vm0, %v5794_v7  ;;  %4887 = vmatprep.subr.mxu1 %v4866_v20 }
 0x161   : > { %v1542_v21 = vpop.f32.mrf.mxu0  ;;  %4888 = vmatpush3.msra.mxu1 %v4866_v20  ;;  %4891 = vmatprep.mubr.msk.f32.mxu1 %vm341_vm0, %v5789_v4 }
 0x162   : > { %4889 = vmatprep.subr.mxu1 %v1542_v21 }
 0x163   : > { %v4869_v22 = vpop.f32.mrf.mxu0  ;;  %4890 = vmatpush3.msra.mxu1 %v1542_v21 }
 0x164   : > { %4892 = vmatmul.mubr.msk.f32.vlgmr.msra.gmra.mxu1 %vm341_vm0, %v5794_v7  ;;  %4894 = vmatprep.subr.mxu1 %v4869_v22 }
 0x165   : > { %v1552_v23 = vpop.f32.mrf.mxu0  ;;  %4895 = vmatpush3.msra.mxu1 %v4869_v22  ;;  %4898 = vmatprep.mubr.msk.f32.mxu1 %vm341_vm0, %v5789_v4 }
 0x166   : > { %4896 = vmatprep.subr.mxu1 %v1552_v23 }
 0x167   : > { %v4872_v24 = vpop.f32.mrf.mxu0  ;;  %4897 = vmatpush3.msra.mxu1 %v1552_v23 }
 0x168   : > { %4899 = vmatmul.mubr.msk.f32.vlgmr.msra.gmra.mxu1 %vm341_vm0, %v5794_v7  ;;  %4901 = vmatprep.subr.mxu1 %v4872_v24 }
 0x169   : > { %v1562_v25 = vpop.f32.mrf.mxu0  ;;  %4902 = vmatpush3.msra.mxu1 %v4872_v24  ;;  %4905 = vmatprep.mubr.msk.f32.mxu1 %vm341_vm0, %v5789_v4 }
 0x16a   : > { %4903 = vmatprep.subr.mxu1 %v1562_v25 }
 0x16b   : > { %4904 = vmatpush3.msra.mxu1 %v1562_v25  ;;  %v4914_v27 = vpop.f32.mrf.mxu0 }
 0x16c   : > { %4906 = vmatmul.mubr.msk.f32.vlgmr.msra.gmra.mxu1 %vm341_vm0, %v5794_v7  ;;  %4927 = vmatprep.subr.mxu1 %v4914_v27 }
 0x16d   : > { %v2044_v28 = vpop.f32.mrf.mxu0  ;;  %4928 = vmatpush3.msra.mxu1 %v4914_v27  ;;  %4931 = vmatprep.mubr.msk.f32.mxu1 %vm341_vm0, %v1976_v26 }
 0x16e   : > { %4929 = vmatprep.subr.mxu1 %v2044_v28 }
 0x16f   : > { %v4917_v30 = vpop.f32.mrf.mxu0  ;;  %4930 = vmatpush3.msra.mxu1 %v2044_v28 }
 0x170   : > { %4932 = vmatmul.mubr.msk.f32.vlgmr.msra.gmra.mxu1 %vm341_vm0, %v1977_v29  ;;  %4934 = vmatprep.subr.mxu1 %v4917_v30 }
 0x171   : > { %v2054_v31 = vpop.f32.mrf.mxu0  ;;  %4935 = vmatpush3.msra.mxu1 %v4917_v30  ;;  %4938 = vmatprep.mubr.msk.f32.mxu1 %vm341_vm0, %v1976_v26 }
 0x172   : > { %4936 = vmatprep.subr.mxu1 %v2054_v31 }
 0x173   : > { %v4920_v32 = vpop.f32.mrf.mxu0  ;;  %4937 = vmatpush3.msra.mxu1 %v2054_v31 }
 0x174   : > { %4939 = vmatmul.mubr.msk.f32.vlgmr.msra.gmra.mxu1 %vm341_vm0, %v1977_v29  ;;  %4941 = vmatprep.subr.mxu1 %v4920_v32 }
 0x175   : > { %v2064_v33 = vpop.f32.mrf.mxu0  ;;  %4942 = vmatpush3.msra.mxu1 %v4920_v32  ;;  %4945 = vmatprep.mubr.msk.f32.mxu1 %vm341_vm0, %v1976_v26 }
 0x176   : > { %4943 = vmatprep.subr.mxu1 %v2064_v33 }
 0x177   : > { %v4923_v34 = vpop.f32.mrf.mxu0  ;;  %4944 = vmatpush3.msra.mxu1 %v2064_v33 }
 0x178   : > { %4946 = vmatmul.mubr.msk.f32.vlgmr.msra.gmra.mxu1 %vm341_vm0, %v1977_v29  ;;  %4948 = vmatprep.subr.mxu1 %v4923_v34 }
 0x179   : > { %v2074_v35 = vpop.f32.mrf.mxu0  ;;  %4949 = vmatpush3.msra.mxu1 %v4923_v34  ;;  %4952 = vmatprep.mubr.msk.f32.mxu1 %vm341_vm0, %v1976_v26 }
 0x17a   : > { %4950 = vmatprep.subr.mxu1 %v2074_v35 }
 0x17b   : > { %v4926_v36 = vpop.f32.mrf.mxu0  ;;  %4951 = vmatpush3.msra.mxu1 %v2074_v35 }
 0x17c   : > { %4953 = vmatmul.mubr.msk.f32.vlgmr.msra.gmra.mxu1 %vm341_vm0, %v1977_v29  ;;  %4955 = vmatprep.subr.mxu1 %v4926_v36 }
 0x17d   : > { %v2084_v37 = vpop.f32.mrf.mxu0  ;;  %4956 = vmatpush3.msra.mxu1 %v4926_v36  ;;  %4959 = vmatprep.mubr.msk.f32.mxu1 %vm341_vm0, %v1976_v26 }
 0x17e   : > { %4957 = vmatprep.subr.mxu1 %v2084_v37 }
 0x17f   : > { %4958 = vmatpush3.msra.mxu1 %v2084_v37  ;;  %v4968_v39 = vpop.f32.mrf.mxu0 }
 0x180   : > { %4960 = vmatmul.mubr.msk.f32.vlgmr.msra.gmra.mxu1 %vm341_vm0, %v1977_v29  ;;  %4981 = vmatprep.subr.mxu1 %v4968_v39 }
 0x181   : > { %v2576_v40 = vpop.f32.mrf.mxu0  ;;  %4982 = vmatpush3.msra.mxu1 %v4968_v39  ;;  %4985 = vmatprep.mubr.msk.f32.mxu1 %vm341_vm0, %v5843_v38 }
 0x182   : > { %4983 = vmatprep.subr.mxu1 %v2576_v40 }
 0x183   : > { %v4971_v42 = vpop.f32.mrf.mxu0  ;;  %4984 = vmatpush3.msra.mxu1 %v2576_v40 }
 0x184   : > { %4986 = vmatmul.mubr.msk.f32.vlgmr.msra.gmra.mxu1 %vm341_vm0, %v5848_v41  ;;  %4988 = vmatprep.subr.mxu1 %v4971_v42 }
 0x185   : > { %v2586_v43 = vpop.f32.mrf.mxu0  ;;  %4989 = vmatpush3.msra.mxu1 %v4971_v42  ;;  %4992 = vmatprep.mubr.msk.f32.mxu1 %vm341_vm0, %v5843_v38 }
 0x186   : > { %4990 = vmatprep.subr.mxu1 %v2586_v43 }
 0x187   : > { %v4974_v44 = vpop.f32.mrf.mxu0  ;;  %4991 = vmatpush3.msra.mxu1 %v2586_v43 }
 0x188   : > { %4993 = vmatmul.mubr.msk.f32.vlgmr.msra.gmra.mxu1 %vm341_vm0, %v5848_v41  ;;  %4995 = vmatprep.subr.mxu1 %v4974_v44 }
 0x189   : > { %v2596_v45 = vpop.f32.mrf.mxu0  ;;  %4996 = vmatpush3.msra.mxu1 %v4974_v44  ;;  %4999 = vmatprep.mubr.msk.f32.mxu1 %vm341_vm0, %v5843_v38 }
 0x18a   : > { %4997 = vmatprep.subr.mxu1 %v2596_v45 }
 0x18b   : > { %v4977_v46 = vpop.f32.mrf.mxu0  ;;  %4998 = vmatpush3.msra.mxu1 %v2596_v45 }
 0x18c   : > { %5000 = vmatmul.mubr.msk.f32.vlgmr.msra.gmra.mxu1 %vm341_vm0, %v5848_v41  ;;  %5002 = vmatprep.subr.mxu1 %v4977_v46 }
 0x18d   : > { %v2606_v47 = vpop.f32.mrf.mxu0  ;;  %5003 = vmatpush3.msra.mxu1 %v4977_v46  ;;  %5006 = vmatprep.mubr.msk.f32.mxu1 %vm341_vm0, %v5843_v38 }
 0x18e   : > { %5004 = vmatprep.subr.mxu1 %v2606_v47 }
 0x18f   : > { %v4980_v48 = vpop.f32.mrf.mxu0  ;;  %5005 = vmatpush3.msra.mxu1 %v2606_v47 }
 0x190   : > { %5007 = vmatmul.mubr.msk.f32.vlgmr.msra.gmra.mxu1 %vm341_vm0, %v5848_v41  ;;  %5009 = vmatprep.subr.mxu1 %v4980_v48 }
 0x191   : > { %v2616_v49 = vpop.f32.mrf.mxu0  ;;  %5010 = vmatpush3.msra.mxu1 %v4980_v48  ;;  %5013 = vmatprep.mubr.msk.f32.mxu1 %vm341_vm0, %v5843_v38 }
 0x192   : > { %5011 = vmatprep.subr.mxu1 %v2616_v49 }
 0x193   : > { %5012 = vmatpush3.msra.mxu1 %v2616_v49  ;;  %v5022_v50 = vpop.f32.mrf.mxu0 }
 0x194   : > { %5014 = vmatmul.mubr.msk.f32.vlgmr.msra.gmra.mxu1 %vm341_vm0, %v5848_v41  ;;  %5035 = vmatprep.subr.mxu1 %v5022_v50 }
 0x195   : > { %v3128_v51 = vpop.f32.mrf.mxu0  ;;  %5036 = vmatpush3.msra.mxu1 %v5022_v50  ;;  %5039 = vmatprep.mubr.msk.f32.mxu1 %vm341_vm0, %v5843_v38 }
 0x196   : > { %5037 = vmatprep.subr.mxu1 %v3128_v51 }
 0x197   : > { %v5025_v52 = vpop.f32.mrf.mxu0  ;;  %5038 = vmatpush3.msra.mxu1 %v3128_v51 }
 0x198   : > { %5040 = vmatmul.mubr.msk.f32.vlgmr.msra.gmra.mxu1 %vm341_vm0, %v5848_v41  ;;  %5042 = vmatprep.subr.mxu1 %v5025_v52 }
 0x199   : > { %v3138_v53 = vpop.f32.mrf.mxu0  ;;  %5043 = vmatpush3.msra.mxu1 %v5025_v52  ;;  %5046 = vmatprep.mubr.msk.f32.mxu1 %vm341_vm0, %v5843_v38 }
 0x19a   : > { %5044 = vmatprep.subr.mxu1 %v3138_v53 }
 0x19b   : > { %v5028_v54 = vpop.f32.mrf.mxu0  ;;  %5045 = vmatpush3.msra.mxu1 %v3138_v53 }
 0x19c   : > { %5047 = vmatmul.mubr.msk.f32.vlgmr.msra.gmra.mxu1 %vm341_vm0, %v5848_v41  ;;  %5049 = vmatprep.subr.mxu1 %v5028_v54 }
 0x19d   : > { %v3148_v55 = vpop.f32.mrf.mxu0  ;;  %5050 = vmatpush3.msra.mxu1 %v5028_v54  ;;  %5053 = vmatprep.mubr.msk.f32.mxu1 %vm341_vm0, %v5843_v38 }
 0x19e   : > { %5051 = vmatprep.subr.mxu1 %v3148_v55 }
 0x19f   : > { %v5031_v56 = vpop.f32.mrf.mxu0  ;;  %5052 = vmatpush3.msra.mxu1 %v3148_v55 }
 0x1a0   : > { %5054 = vmatmul.mubr.msk.f32.vlgmr.msra.gmra.mxu1 %vm341_vm0, %v5848_v41  ;;  %5056 = vmatprep.subr.mxu1 %v5031_v56 }
 0x1a1   : > { %v3158_v57 = vpop.f32.mrf.mxu0  ;;  %5057 = vmatpush3.msra.mxu1 %v5031_v56  ;;  %5060 = vmatprep.mubr.msk.f32.mxu1 %vm341_vm0, %v5843_v38 }
 0x1a2   : > { %5058 = vmatprep.subr.mxu1 %v3158_v57 }
 0x1a3   : > { %v5034_v58 = vpop.f32.mrf.mxu0  ;;  %5059 = vmatpush3.msra.mxu1 %v3158_v57 }
 0x1a4   : > { %5061 = vmatmul.mubr.msk.f32.vlgmr.msra.gmra.mxu1 %vm341_vm0, %v5848_v41  ;;  %5063 = vmatprep.subr.mxu1 %v5034_v58 }
 0x1a5   : > { %v3168_v59 = vpop.f32.mrf.mxu0  ;;  %5064 = vmatpush3.msra.mxu1 %v5034_v58  ;;  %5067 = vmatprep.mubr.msk.f32.mxu1 %vm341_vm0, %v5843_v38 }
 0x1a6   : > { %5065 = vmatprep.subr.mxu1 %v3168_v59 }
 0x1a7   : > { %5066 = vmatpush3.msra.mxu1 %v3168_v59  ;;  %v5076_v61 = vpop.f32.mrf.mxu0 }
 0x1a8   : > { %5068 = vmatmul.mubr.msk.f32.vlgmr.msra.gmra.mxu1 %vm341_vm0, %v5848_v41  ;;  %5092 = vmatprep.subr.mxu1 %v5076_v61 }
 0x1a9   : > { %v3658_v62 = vpop.f32.mrf.mxu0  ;;  %5093 = vmatpush3.msra.mxu1 %v5076_v61  ;;  %5096 = vmatprep.mubr.msk.f32.mxu1 %vm341_vm0, %v3584_v60 }
 0x1aa   : > { %5094 = vmatprep.subr.mxu1 %v3658_v62 }
 0x1ab   : > { %v5079_v0 = vpop.f32.mrf.mxu0  ;;  %5095 = vmatpush3.msra.mxu1 %v3658_v62 }
 0x1ac   : > { %5097 = vmatmul.mubr.msk.f32.vlgmr.msra.gmra.mxu1 %vm341_vm0, %v3585_v63  ;;  %5099 = vmatprep.subr.mxu1 %v5079_v0 }
 0x1ad   : > { %v3668_v1 = vpop.f32.mrf.mxu0  ;;  %5100 = vmatpush3.msra.mxu1 %v5079_v0  ;;  %5103 = vmatprep.mubr.msk.f32.mxu1 %vm341_vm0, %v3584_v60 }
 0x1ae   : > { %5101 = vmatprep.subr.mxu1 %v3668_v1 }
 0x1af   : > { %v5082_v2 = vpop.f32.mrf.mxu0  ;;  %5102 = vmatpush3.msra.mxu1 %v3668_v1 }
 0x1b0   : > { %5104 = vmatmul.mubr.msk.f32.vlgmr.msra.gmra.mxu1 %vm341_vm0, %v3585_v63  ;;  %5106 = vmatprep.subr.mxu1 %v5082_v2 }
 0x1b1   : > { %v3678_v3 = vpop.f32.mrf.mxu0  ;;  %5107 = vmatpush3.msra.mxu1 %v5082_v2  ;;  %5110 = vmatprep.mubr.msk.f32.mxu1 %vm341_vm0, %v3584_v60 }
 0x1b2   : > { %5108 = vmatprep.subr.mxu1 %v3678_v3 }
 0x1b3   : > { %v5085_v4 = vpop.f32.mrf.mxu0  ;;  %5109 = vmatpush3.msra.mxu1 %v3678_v3 }
 0x1b4   : > { %5111 = vmatmul.mubr.msk.f32.vlgmr.msra.gmra.mxu1 %vm341_vm0, %v3585_v63  ;;  %5113 = vmatprep.subr.mxu1 %v5085_v4 }
 0x1b5   : > { %v3688_v5 = vpop.f32.mrf.mxu0  ;;  %5114 = vmatpush3.msra.mxu1 %v5085_v4  ;;  %5117 = vmatprep.mubr.msk.f32.mxu1 %vm341_vm0, %v3584_v60 }
 0x1b6   : > { %5115 = vmatprep.subr.mxu1 %v3688_v5 }
 0x1b7   : > { %v5088_v6 = vpop.f32.mrf.mxu0  ;;  %5116 = vmatpush3.msra.mxu1 %v3688_v5 }
 0x1b8   : > { %5118 = vmatmul.mubr.msk.f32.vlgmr.msra.gmra.mxu1 %vm341_vm0, %v3585_v63  ;;  %5120 = vmatprep.subr.mxu1 %v5088_v6 }
 0x1b9   : > { %v3698_v7 = vpop.f32.mrf.mxu0  ;;  %5121 = vmatpush3.msra.mxu1 %v5088_v6  ;;  %5124 = vmatprep.mubr.msk.f32.mxu1 %vm341_vm0, %v3584_v60 }
 0x1ba   : > { %5122 = vmatprep.subr.mxu1 %v3698_v7 }
 0x1bb   : > { %5123 = vmatpush3.msra.mxu1 %v3698_v7  ;;  %v5091_v8 = vpop.f32.mrf.mxu0 }
 0x1bc   : > { %5125 = vmatmul.mubr.msk.f32.vlgmr.msra.gmra.mxu1 %vm341_vm0, %v3585_v63  ;;  %5127 = vmatprep.subr.mxu1 %v5091_v8 }
 0x1bd   : > { %v3708_v9 = vpop.f32.mrf.mxu0  ;;  %5128 = vmatpush3.msra.mxu1 %v5091_v8  ;;  %5131 = vmatprep.mubr.msk.f32.mxu1 %vm341_vm0, %v3584_v60 }
 0x1be   : > { %5129 = vmatprep.subr.mxu1 %v3708_v9 }
 0x1bf   : > { %5130 = vmatpush3.msra.mxu1 %v3708_v9 }
 0x1c0   : > { %5132 = vmatmul.mubr.msk.f32.vlgmr.msra.gmra.mxu1 %vm341_vm0, %v3585_v63 }
 0x1f4   : > { %v4771_v10 = vpop.f32.mrf.mxu1 }
 0x1f5   : > { %v869_v15 = vmul.f32 %v4771_v10, %v4771_v10 }
 0x1f6   : > { %v559_v11 = vpop.f32.mrf.mxu1 }
 0x1f7   : > { %v868_v18 = vmul.f32 %v559_v11, %v559_v11 }
 0x1f8   : > { %v4778_v12 = vpop.f32.mrf.mxu1 }
 0x1f9   : > { %v873_v13 = vmul.f32 %v4778_v12, %v4771_v10  ;;  %v871_v21 = vmul.f32 %v4778_v12, %v4778_v12 }
 0x1fa   : > { %v634_v14 = vpop.f32.mrf.mxu1 }
 0x1fb   : > { %v872_v16 = vmul.f32 %v634_v14, %v559_v11  ;;  %v870_v24 = vmul.f32 %v634_v14, %v634_v14 }
 0x1fc   : > { %v4785_v17 = vpop.f32.mrf.mxu1 }
 0x1fd   : > { %v875_v19 = vsub.f32 %v4785_v17, %v869_v15 }
 0x1fe   : > { %v709_v20 = vpop.f32.mrf.mxu1 }
 0x1ff   : > { %v874_v22 = vsub.f32 %v709_v20, %v868_v18 }
 0x200   : > { %v4792_v23 = vpop.f32.mrf.mxu1 }
 0x201   : > { %v877_v25 = vsub.f32 %v4792_v23, %v871_v21 }
 0x202   : > { %v784_v26 = vpop.f32.mrf.mxu1 }
 0x203   : > { %v885_v27 = vadd.f32 %v877_v25, %v875_v19  ;;  %v876_v28 = vsub.f32 %v784_v26, %v870_v24 }
 0x204   : > { %v4799_v29 = vpop.f32.mrf.mxu1 }
 0x205   : > { %v887_v30 = vadd.f32 0.0009, %v885_v27  ;;  %v884_v31 = vadd.f32 %v876_v28, %v874_v22  ;;  %v879_v32 = vsub.f32 %v4799_v29, %v873_v13 }
 0x206   : > { %v859_v33 = vpop.f32.mrf.mxu1 }
 0x207   : > { %5206 = vrcp.f32 %v887_v30  ;;  %v886_v34 = vadd.f32 0.0009, %v884_v31  ;;  %v878_v35 = vsub.f32 %v859_v33, %v872_v16  ;;  %v881_v41 = vmul.f32 2.0, %v879_v32 }
 0x208   : > { %v4825_v36 = vpop.f32.mrf.mxu1 }
 0x209   : > { %5208 = vrcp.f32 %v886_v34  ;;  %v1399_v42 = vmul.f32 %v4825_v36, %v4825_v36  ;;  %v880_v45 = vmul.f32 2.0, %v878_v35  ;;  %v883_v49 = vadd.f32 0.0009, %v881_v41 }
 0x20a   : > { %v1089_v37 = vpop.f32.mrf.mxu1 }
 0x20b   : > { %v1398_v46 = vmul.f32 %v1089_v37, %v1089_v37  ;;  %v882_v55 = vadd.f32 0.0009, %v880_v45 }
 0x20c   : > { %v4832_v38 = vpop.f32.mrf.mxu1 }
 0x20d   : > { %v1403_v39 = vmul.f32 %v4832_v38, %v4825_v36  ;;  %v1401_v50 = vmul.f32 %v4832_v38, %v4832_v38 }
 0x20e   : > { %v1164_v40 = vpop.f32.mrf.mxu1 }
 0x20f   : > { %v1402_v43 = vmul.f32 %v1164_v40, %v1089_v37  ;;  %v1400_v56 = vmul.f32 %v1164_v40, %v1164_v40 }
 0x210   : > { %v4839_v44 = vpop.f32.mrf.mxu1 }
 0x211   : > { %v1405_v47 = vsub.f32 %v4839_v44, %v1399_v42 }
 0x212   : > { %v1239_v48 = vpop.f32.mrf.mxu1 }
 0x213   : > { %v1404_v51 = vsub.f32 %v1239_v48, %v1398_v46 }
 0x214   : > { %v5207_v52 = vpop.eup %5206  ;;  %v4846_v53 = vpop.f32.mrf.mxu1 }
 0x215   : > { %v891_v54 = vmul.f32 %v5207_v52, %v883_v49  ;;  %v1407_v57 = vsub.f32 %v4846_v53, %v1401_v50 }
 0x216   : > { %v5209_v58 = vpop.eup %5208  ;;  %v1314_v59 = vpop.f32.mrf.mxu1 }
 0x217   : > { %v889_v60 = vmul.f32 %v5209_v58, %v882_v55  ;;  %v1415_v61 = vadd.f32 %v1407_v57, %v1405_v47  ;;  %v1406_v62 = vsub.f32 %v1314_v59, %v1400_v56  ;;  %v893_v18 = vmul.f32 %v891_v54, %v891_v54 }
 0x218   : > { %v4853_v63 = vpop.f32.mrf.mxu1 }
 0x219   : > { %v1417_v0 = vadd.f32 0.0009, %v1415_v61  ;;  %v1414_v1 = vadd.f32 %v1406_v62, %v1404_v51  ;;  %v1409_v2 = vsub.f32 %v4853_v63, %v1403_v39  ;;  %v892_v24 = vmul.f32 %v889_v60, %v889_v60 }
 0x21a   : > { %v1389_v3 = vpop.f32.mrf.mxu1  ;;  %v895_v31 = vmul.f32 %v893_v18, %v891_v54 }
 0x21b   : > { %5210 = vrcp.f32 %v1417_v0  ;;  %v1416_v4 = vadd.f32 0.0009, %v1414_v1  ;;  %v1408_v5 = vsub.f32 %v1389_v3, %v1402_v43  ;;  %v1411_v11 = vmul.f32 2.0, %v1409_v2 }
 0x21c   : > { %v4879_v6 = vpop.f32.mrf.mxu1  ;;  %v894_v37 = vmul.f32 %v892_v24, %v889_v60 }
 0x21d   : > { %5212 = vrcp.f32 %v1416_v4  ;;  %v1947_v12 = vmul.f32 %v4879_v6, %v4879_v6  ;;  %v1410_v15 = vmul.f32 2.0, %v1408_v5  ;;  %v1413_v20 = vadd.f32 0.0009, %v1411_v11 }
 0x21e   : > { %v1637_v7 = vpop.f32.mrf.mxu1 }
 0x21f   : > { %v1946_v16 = vmul.f32 %v1637_v7, %v1637_v7  ;;  %v1412_v27 = vadd.f32 0.0009, %v1410_v15 }
 0x220   : > { %v4886_v8 = vpop.f32.mrf.mxu1 }
 0x221   : > { %v1951_v9 = vmul.f32 %v4886_v8, %v4879_v6  ;;  %v1949_v21 = vmul.f32 %v4886_v8, %v4886_v8 }
 0x222   : > { %v1712_v10 = vpop.f32.mrf.mxu1 }
 0x223   : > { %v1950_v13 = vmul.f32 %v1712_v10, %v1637_v7  ;;  %v1948_v28 = vmul.f32 %v1712_v10, %v1712_v10 }
 0x224   : > { %v4893_v14 = vpop.f32.mrf.mxu1 }
 0x225   : > { %v1953_v17 = vsub.f32 %v4893_v14, %v1947_v12 }
 0x226   : > { %v1787_v19 = vpop.f32.mrf.mxu1 }
 0x227   : > { %v1952_v22 = vsub.f32 %v1787_v19, %v1946_v16 }
 0x228   : > { %v5211_v23 = vpop.eup %5210  ;;  %v4900_v25 = vpop.f32.mrf.mxu1 }
 0x229   : > { %v1421_v26 = vmul.f32 %v5211_v23, %v1413_v20  ;;  %v1955_v29 = vsub.f32 %v4900_v25, %v1949_v21 }
 0x22a   : > { %v5213_v30 = vpop.eup %5212  ;;  %v1862_v32 = vpop.f32.mrf.mxu1 }
 0x22b   : > { %v1423_v33 = vmul.f32 %v1421_v26, %v1421_v26  ;;  %v1419_v34 = vmul.f32 %v5213_v30, %v1412_v27  ;;  %v1963_v35 = vadd.f32 %v1955_v29, %v1953_v17  ;;  %v1954_v36 = vsub.f32 %v1862_v32, %v1948_v28 }
 0x22c   : > { %v4907_v38 = vpop.f32.mrf.mxu1 }
 0x22d   : > { %v1425_v39 = vmul.f32 %v1423_v33, %v895_v31  ;;  %v1422_v40 = vmul.f32 %v1419_v34, %v1419_v34  ;;  %v1965_v41 = vadd.f32 0.0009, %v1963_v35  ;;  %v1962_v42 = vadd.f32 %v1954_v36, %v1952_v22 }
 0x22e   : > { %v1957_v43 = vsub.f32 %v4907_v38, %v1951_v9  ;;  %v1937_v44 = vpop.f32.mrf.mxu1 }
 0x22f   : > { %v1424_v45 = vmul.f32 %v1422_v40, %v894_v37  ;;  %5214 = vrcp.f32 %v1965_v41  ;;  %v1964_v46 = vadd.f32 0.0009, %v1962_v42  ;;  %v1956_v47 = vsub.f32 %v1937_v44, %v1950_v13 }
 0x230   : > { %v4933_v48 = vpop.f32.mrf.mxu1  ;;  %v1959_v53 = vmul.f32 2.0, %v1957_v43 }
 0x231   : > { %5216 = vrcp.f32 %v1964_v46  ;;  %v2475_v54 = vmul.f32 %v4933_v48, %v4933_v48  ;;  %v1958_v57 = vmul.f32 2.0, %v1956_v47 }
 0x232   : > { %v2165_v49 = vpop.f32.mrf.mxu1  ;;  %v1961_v60 = vadd.f32 0.0009, %v1959_v53 }
 0x233   : > { %v2474_v63 = vmul.f32 %v2165_v49, %v2165_v49  ;;  %v1960_v2 = vadd.f32 0.0009, %v1958_v57 }
 0x234   : > { %v4940_v50 = vpop.f32.mrf.mxu1 }
 0x235   : > { %v2479_v51 = vmul.f32 %v4940_v50, %v4933_v48  ;;  %v2477_v61 = vmul.f32 %v4940_v50, %v4940_v50 }
 0x236   : > { %v2240_v52 = vpop.f32.mrf.mxu1 }
 0x237   : > { %v2478_v55 = vmul.f32 %v2240_v52, %v2165_v49  ;;  %v2476_v3 = vmul.f32 %v2240_v52, %v2240_v52 }
 0x238   : > { %v4947_v56 = vpop.f32.mrf.mxu1 }
 0x239   : > { %v2481_v58 = vsub.f32 %v4947_v56, %v2475_v54 }
 0x23a   : > { %v2315_v59 = vpop.f32.mrf.mxu1 }
 0x23b   : > { %v2480_v6 = vsub.f32 %v2315_v59, %v2474_v63 }
 0x23c   : > { %v5215_v62 = vpop.eup %5214  ;;  %v4954_v0 = vpop.f32.mrf.mxu1 }
 0x23d   : > { %v1969_v1 = vmul.f32 %v5215_v62, %v1961_v60  ;;  %v2483_v4 = vsub.f32 %v4954_v0, %v2477_v61 }
 0x23e   : > { %v5217_v5 = vpop.eup %5216  ;;  %v2390_v7 = vpop.f32.mrf.mxu1 }
 0x23f   : > { %v1971_v8 = vmul.f32 %v1969_v1, %v1425_v39  ;;  %v1967_v9 = vmul.f32 %v5217_v5, %v1960_v2  ;;  %v2491_v10 = vadd.f32 %v2483_v4, %v2481_v58  ;;  %v2482_v11 = vsub.f32 %v2390_v7, %v2476_v3 }
 0x240   : > { %v4961_v12 = vpop.f32.mrf.mxu1 }
 0x241   : > { %v1970_v13 = vmul.f32 %v1967_v9, %v1424_v45  ;;  %v2493_v14 = vadd.f32 0.0009, %v2491_v10  ;;  %v2490_v15 = vadd.f32 %v2482_v11, %v2480_v6  ;;  %v2485_v16 = vsub.f32 %v4961_v12, %v2479_v51 }
 0x242   : > { %v2465_v17 = vpop.f32.mrf.mxu1 }
 0x243   : > { %5218 = vrcp.f32 %v2493_v14  ;;  %v2492_v18 = vadd.f32 0.0009, %v2490_v15  ;;  %v2484_v19 = vsub.f32 %v2465_v17, %v2478_v55  ;;  %v2487_v25 = vmul.f32 2.0, %v2485_v16 }
 0x244   : > { %v4987_v20 = vpop.f32.mrf.mxu1 }
 0x245   : > { %5220 = vrcp.f32 %v2492_v18  ;;  %v2486_v26 = vmul.f32 2.0, %v2484_v19  ;;  %v2489_v29 = vadd.f32 0.0009, %v2487_v25  ;;  %v3007_v30 = vmul.f32 %v4987_v20, %v4987_v20 }
 0x246   : > { %v2697_v21 = vpop.f32.mrf.mxu1 }
 0x247   : > { %v2488_v33 = vadd.f32 0.0009, %v2486_v26  ;;  %v3006_v34 = vmul.f32 %v2697_v21, %v2697_v21 }
 0x248   : > { %v4994_v22 = vpop.f32.mrf.mxu1 }
 0x249   : > { %v3011_v23 = vmul.f32 %v4994_v22, %v4987_v20  ;;  %v3009_v31 = vmul.f32 %v4994_v22, %v4994_v22 }
 0x24a   : > { %v2772_v24 = vpop.f32.mrf.mxu1 }
 0x24b   : > { %v3008_v37 = vmul.f32 %v2772_v24, %v2772_v24  ;;  %v3010_v59 = vmul.f32 %v2772_v24, %v2697_v21 }
 0x24c   : > { %v5001_v27 = vpop.f32.mrf.mxu1 }
 0x24d   : > { %v3013_v38 = vsub.f32 %v5001_v27, %v3007_v30 }
 0x24e   : > { %v2847_v28 = vpop.f32.mrf.mxu1 }
 0x24f   : > { %v3012_v41 = vsub.f32 %v2847_v28, %v3006_v34 }
 0x250   : > { %v5219_v32 = vpop.eup %5218  ;;  %v5008_v35 = vpop.f32.mrf.mxu1 }
 0x251   : > { %v2497_v36 = vmul.f32 %v5219_v32, %v2489_v29  ;;  %v3015_v39 = vsub.f32 %v5008_v35, %v3009_v31 }
 0x252   : > { %v5221_v40 = vpop.eup %5220  ;;  %v2922_v42 = vpop.f32.mrf.mxu1 }
 0x253   : > { %v2499_v43 = vmul.f32 %v2497_v36, %v2497_v36  ;;  %v2495_v44 = vmul.f32 %v5221_v40, %v2488_v33  ;;  %v3023_v45 = vadd.f32 %v3015_v39, %v3013_v38  ;;  %v3014_v46 = vsub.f32 %v2922_v42, %v3008_v37 }
 0x254   : > { %v5015_v47 = vpop.f32.mrf.mxu1 }
 0x255   : > { %v2501_v48 = vmul.f32 %v2499_v43, %v2497_v36  ;;  %v2498_v49 = vmul.f32 %v2495_v44, %v2495_v44  ;;  %v3025_v50 = vadd.f32 0.0009, %v3023_v45  ;;  %v3022_v51 = vadd.f32 %v3014_v46, %v3012_v41 }
 0x256   : > { %v2997_v52 = vpop.f32.mrf.mxu1  ;;  %v3017_v60 = vsub.f32 %v5015_v47, %v3011_v23 }
 0x257   : > { %v2500_v53 = vmul.f32 %v2498_v49, %v2495_v44  ;;  %5222 = vrcp.f32 %v3025_v50  ;;  %v3024_v54 = vadd.f32 0.0009, %v3022_v51  ;;  %v2503_v55 = vmul.f32 %v2501_v48, %v1971_v8 }
 0x258   : > { %v5041_v56 = vpop.f32.mrf.mxu1  ;;  %v3016_v62 = vsub.f32 %v2997_v52, %v3010_v59  ;;  %v3019_v0 = vmul.f32 2.0, %v3017_v60 }
 0x259   : > { %5224 = vrcp.f32 %v3024_v54  ;;  %v2502_v57 = vmul.f32 %v2500_v53, %v1970_v13  ;;  %v3553_v19 = vmul.f32 %v5041_v56, %v5041_v56 }
 0x25a   : > { %v5900_v58 = vpop.f32.mrf.mxu1  ;;  %v3018_v2 = vmul.f32 2.0, %v3016_v62  ;;  %v3021_v4 = vadd.f32 0.0009, %v3019_v0 }
 0x25b   : > { %v3552_v21 = vmul.f32 %v5900_v58, %v5900_v58 }
 0x25c   : > { %v5048_v61 = vpop.f32.mrf.mxu1  ;;  %v3020_v9 = vadd.f32 0.0009, %v3018_v2 }
 0x25d   : > { %v3555_v16 = vmul.f32 %v5048_v61, %v5048_v61  ;;  %v3557_v49 = vmul.f32 %v5048_v61, %v5041_v56 }
 0x25e   : > { %v3318_v63 = vpop.f32.mrf.mxu1 }
 0x25f   : > { %v3554_v17 = vmul.f32 %v3318_v63, %v3318_v63  ;;  %v3556_v53 = vmul.f32 %v3318_v63, %v5900_v58 }
 0x260   : > { %v5055_v1 = vpop.f32.mrf.mxu1 }
 0x261   : > { %v3559_v24 = vsub.f32 %v5055_v1, %v3553_v19 }
 0x262   : > { %v3393_v3 = vpop.f32.mrf.mxu1 }
 0x263   : > { %v3558_v25 = vsub.f32 %v3393_v3, %v3552_v21 }
 0x264   : > { %v5223_v5 = vpop.eup %5222  ;;  %v5062_v6 = vpop.f32.mrf.mxu1 }
 0x265   : > { %v3029_v7 = vmul.f32 %v5223_v5, %v3021_v4  ;;  %v3561_v20 = vsub.f32 %v5062_v6, %v3555_v16 }
 0x266   : > { %v5225_v8 = vpop.eup %5224  ;;  %v3468_v10 = vpop.f32.mrf.mxu1 }
 0x267   : > { %v5902_v11 = vmul.f32 %v3029_v7, %v2503_v55  ;;  %v3027_v12 = vmul.f32 %v5225_v8, %v3020_v9  ;;  %v3560_v22 = vsub.f32 %v3468_v10, %v3554_v17  ;;  %v3569_v27 = vadd.f32 %v3561_v20, %v3559_v24 }
 0x268   : > { %v5069_v13 = vpop.f32.mrf.mxu1 }
 0x269   : > { %v5904_v14 = vmul.f32 %v3027_v12, %v2502_v57  ;;  %v3568_v30 = vadd.f32 %v3560_v22, %v3558_v25  ;;  %v3571_v36 = vadd.f32 0.0009, %v3569_v27  ;;  %v3563_v54 = vsub.f32 %v5069_v13, %v3557_v49 }
 0x26a   : > { %v3543_v15 = vpop.f32.mrf.mxu1 }
 0x26b   : > { %v3570_v38 = vadd.f32 0.0009, %v3568_v30  ;;  %5226 = vrcp.f32 %v3571_v36  ;;  %v3562_v57 = vsub.f32 %v3543_v15, %v3556_v53  ;;  %v3565_v62 = vmul.f32 2.0, %v3563_v54 }
 0x26c   : > { %v5098_v18 = vpop.f32.mrf.mxu1 }
 0x26d   : > { %v4174_v28 = vmul.f32 %v5098_v18, %v5098_v18  ;;  %5228 = vrcp.f32 %v3570_v38  ;;  %v3564_v2 = vmul.f32 2.0, %v3562_v57  ;;  %v3567_v5 = vadd.f32 0.0009, %v3565_v62 }
 0x26e   : > { %v3789_v23 = vpop.f32.mrf.mxu1 }
 0x26f   : > { %v4173_v32 = vmul.f32 %v3789_v23, %v3789_v23  ;;  %v3566_v63 = vadd.f32 0.0009, %v3564_v2 }
 0x270   : > { %v5105_v26 = vpop.f32.mrf.mxu1 }
 0x271   : > { %v4176_v29 = vmul.f32 %v5105_v26, %v5105_v26  ;;  %v4178_v59 = vmul.f32 %v5105_v26, %v5098_v18 }
 0x272   : > { %v3864_v31 = vpop.f32.mrf.mxu1 }
 0x273   : > { %v4208_v33 = vadd.f32 %v4176_v29, %v4174_v28  ;;  %v4175_v34 = vmul.f32 %v3864_v31, %v3864_v31  ;;  %v4177_v0 = vmul.f32 %v3864_v31, %v3789_v23  ;;  %v4204_v3 = vmul.f32 2.0, %v4178_v59 }
 0x274   : > { %v5112_v35 = vpop.f32.mrf.mxu1 }
 0x275   : > { %v4207_v37 = vadd.f32 %v4175_v34, %v4173_v32  ;;  %v4210_v40 = vadd.f32 0.0001, %v4208_v33  ;;  %v4180_v43 = vsub.f32 %v5112_v35, %v4174_v28  ;;  %v4203_v6 = vmul.f32 2.0, %v4177_v0 }
 0x276   : > { %v3939_v39 = vpop.f32.mrf.mxu1  ;;  %v4206_v8 = vadd.f32 0.0001, %v4204_v3 }
 0x277   : > { %v4209_v42 = vadd.f32 0.0001, %v4207_v37  ;;  %5230 = vrcp.f32 %v4210_v40  ;;  %v4179_v46 = vsub.f32 %v3939_v39, %v4173_v32  ;;  %v4205_v16 = vadd.f32 0.0001, %v4203_v6 }
 0x278   : > { %v5119_v41 = vpop.f32.mrf.mxu1  ;;  %v5227_v56 = vpop.eup %5226 }
 0x279   : > { %v4182_v44 = vsub.f32 %v5119_v41, %v4176_v29  ;;  %5232 = vrcp.f32 %v4209_v42  ;;  %v3575_v58 = vmul.f32 %v5227_v56, %v3567_v5 }
 0x27a   : > { %v4014_v45 = vpop.f32.mrf.mxu1  ;;  %v5229_v61 = vpop.eup %5228 }
 0x27b   : > { %v4190_v47 = vadd.f32 %v4182_v44, %v4180_v43  ;;  %v4181_v48 = vsub.f32 %v4014_v45, %v4175_v34  ;;  %v3573_v13 = vmul.f32 %v5229_v61, %v3566_v63  ;;  %v3577_v19 = vmul.f32 %v3575_v58, %v3575_v58 }
 0x27c   : > { %v5126_v52 = vpop.f32.mrf.mxu1 }
 0x27d   : > { %v4192_v50 = vadd.f32 0.0009, %v4190_v47  ;;  %v4189_v51 = vadd.f32 %v4181_v48, %v4179_v46  ;;  %v4184_v1 = vsub.f32 %v5126_v52, %v4178_v59  ;;  %v3576_v24 = vmul.f32 %v3573_v13, %v3573_v13 }
 0x27e   : > { %v4089_v60 = vpop.f32.mrf.mxu1  ;;  %v3579_v29 = vmul.f32 %v3577_v19, %v5902_v11 }
 0x27f   : > { %5234 = vrcp.f32 %v4192_v50  ;;  %v4191_v55 = vadd.f32 0.0009, %v4189_v51  ;;  %v4183_v4 = vsub.f32 %v4089_v60, %v4177_v0  ;;  %v4186_v7 = vmul.f32 2.0, %v4184_v1 }
 0x280   : > { %v5133_v28 = vpop.f32.mrf.mxu1  ;;  %v3578_v33 = vmul.f32 %v3576_v24, %v5904_v14 }
 0x281   : > { %5236 = vrcp.f32 %v4191_v55  ;;  %v4185_v10 = vmul.f32 2.0, %v4183_v4  ;;  %v4188_v17 = vadd.f32 0.0009, %v4186_v7  ;;  %v4220_v41 = vmul.f32 0.33333334, %v5133_v28 }
 0x282   : > { %v4164_v37 = vpop.f32.mrf.mxu1 }
 0x283   : > { %v4187_v22 = vadd.f32 0.0009, %v4185_v10  ;;  %v4219_v42 = vmul.f32 0.33333334, %v4164_v37  ;;  %v4228_v11 = vmul.f32 195.0, %v4220_v41 }
 0x284   : > { %v5231_v9 = vpop.eup %5230 }
 0x285   : > { %v4214_v15 = vmul.f32 %v5231_v9, %v4206_v8  ;;  %v4227_v46 = vmul.f32 195.0, %v4219_v42 }
 0x286   : > { %v5233_v12 = vpop.eup %5232 }
 0x287   : > { %v4212_v20 = vmul.f32 %v5233_v12, %v4205_v16  ;;  %v4216_v25 = vmul.f32 %v4214_v15, %v4214_v15 }
 0x289   : > { %v4215_v30 = vmul.f32 %v4212_v20, %v4212_v20  ;;  %v4218_v36 = vmul.f32 %v4216_v25, %v4214_v15 }
 0x28b   : > { %v4217_v39 = vmul.f32 %v4215_v30, %v4212_v20 }
 0x28c   : > { %v5235_v18 = vpop.eup %5234 }
 0x28d   : > { %v4196_v21 = vmul.f32 %v5235_v18, %v4188_v17 }
 0x28e   : > { %v5237_v23 = vpop.eup %5236 }
 0x28f   : > { %v4198_v26 = vmul.f32 %v4196_v21, %v4196_v21  ;;  %v4194_v27 = vmul.f32 %v5237_v23, %v4187_v22 }
 0x291   : > { %v4200_v31 = vmul.f32 %v4198_v26, %v4196_v21  ;;  %v4197_v32 = vmul.f32 %v4194_v27, %v4194_v27 }
 0x293   : > { %v4199_v34 = vmul.f32 %v4197_v32, %v4194_v27  ;;  %v4202_v35 = vmul.f32 %v4200_v31, %v3579_v29 }
 0x295   : > { %v4201_v38 = vmul.f32 %v4199_v34, %v3578_v33  ;;  %v4222_v40 = vmul.f32 %v4218_v36, %v4202_v35 }
 0x297   : > { %v4221_v43 = vmul.f32 %v4217_v39, %v4201_v38  ;;  %v4224_v44 = vsub.f32 1.0, %v4222_v40 }
 0x299   : > { %v4223_v45 = vsub.f32 1.0, %v4221_v43  ;;  %v4226_v48 = vmul.f32 5.0, %v4224_v44 }
 0x29b   : > { %v4225_v47 = vmul.f32 5.0, %v4223_v45  ;;  %v4230_v50 = vadd.f32 %v4228_v11, %v4226_v48 }
 0x29d   : > { %v4229_v49 = vadd.f32 %v4227_v46, %v4225_v47  ;;  %v4234_v51 = vsel %vm341_vm0, %v4230_v50, 0.0 }
 0x29f   : > { %v4231_v14 = vsel %vm341_vm0, %v4229_v49, 0.0 }
 0x2a0   : > { %4232 = vadd.xlane.f32.xlu0 %v4231_v14 }
 0x2a4   : > { %4235 = vadd.xlane.f32.xlu0 %v4234_v51 }
 0x329   : > { %v4233_v52 = vpop.xlane.xlu0 %4232 }
 0x32a   : > { %4238 = vst.msk [vmem:[%s286_s10] sm:$0xff] %vm4237_vm1, %v4233_v52 }
 0x32d   : > { %v4236_v53 = vpop.xlane.xlu0 %4235 }
 0x32e   : > { %4239 = vst.msk [vmem:[%s286_s10 + $0x8] sm:$0xff] %vm4237_vm1, %v4236_v53 }
 0x32f PF: > { %p18_p3 = scmp.ge.s32.totalorder %s5493_s9, 4   ;;  %s5947_s15 = smov %s5384_s16 }
 0x330   : > { %s5948_s16 = smov %s5388_s17  ;;  %s5949_s17 = smov %s5504_s13 }
 0x331   : > { %s5950_s18 = smov %s5493_s9  ;;  %20 = sbr.rel (!%p18_p3) target bundleno = 6 (0x6), region = 109 }
 0x336   :  { %4261 = vsyncpa [#allocation3], 1 }
 0x337   :  { %4263 = vsyncpa [#allocation3 + $0x1], 1 }
 0x338   :  { %4264 = vsyncpa [#allocation5], 1 }
 0x339   :  { %4266 = vsyncpa [#allocation5 + $0x1], 1 }
 0x33a   :  { %4267 = vsyncpa [#allocation8], 1 }

</bundles_post_ra>
